<compile_context>
chip_gen: v6e
topology: v6e:2x2x1
jax: 0.10.0
libtpu: 0.0.40
codegen_flags: <defaults>
</compile_context>

<pallas_src>
import jax
import jax.numpy as jnp
from jax import lax
from jax.experimental import pallas as pl
from jax.experimental.pallas import tpu as pltpu


# ----------------------------------------------------------------------------
# Fused kernel factory
# ----------------------------------------------------------------------------
def _make_lstm_model_kernel(num_layers: int, T: int, Bt: int, I: int, H: int,
                            unroll: int):
    """Ref order (per grid step over batch tiles):
        x_ref (T, Bt, I)
        per layer: w_ih_t (in, 4H), w_hh_t (H, 4H), bias (1, 4H)
        w_fc_t (H, 1), b_fc (1, 1)
        out_ref (Bt, 1)
        scratch: xp_ref (T*Bt, 4H), hseq_ref (T*Bt, H)
    """

    def kernel(*refs):
        x_ref = refs[0]
        w_fc_ref = refs[1 + 3 * num_layers]
        b_fc_ref = refs[2 + 3 * num_layers]
        out_ref = refs[3 + 3 * num_layers]
        xp_ref = refs[4 + 3 * num_layers]      # (T*Bt, 4H) VMEM scratch
        hseq_ref = refs[5 + 3 * num_layers]    # (T*Bt, H)  VMEM scratch

        h = None
        for layer in range(num_layers):
            w_ih_ref = refs[1 + 3 * layer]     # (in, 4H)
            w_hh_ref = refs[2 + 3 * layer]     # (H, 4H) gate-concat, pre-transposed
            b_ref = refs[3 + 3 * layer]        # (1, 4H) == b_ih + b_hh
            last_layer = layer == num_layers - 1

            # ---- Hoisted, batched input projection: ONE MXU pass per layer.
            if layer == 0:
                # (T, Bt, I) -> (T*Bt, I): sublane-merge, layout no-op (Bt % 8 == 0).
                inp = x_ref[...].reshape(T * Bt, I)
            else:
                inp = hseq_ref[...]            # previous layer's hidden sequence
            xp_ref[...] = (
                jnp.dot(inp, w_ih_ref[...], preferred_element_type=jnp.float32)
                + b_ref[...]
            )

            # ---- Recurrence: single fused (Bt,H)@(H,4H) per step; h/c as carry.
            w_hh = w_hh_ref[...]               # kept in vregs across the loop
            h0 = jnp.zeros((Bt, H), jnp.float32)
            c0 = jnp.zeros((Bt, H), jnp.float32)

            def step(t, hc, _w_hh=w_hh, _last=last_layer):
                h_t, c_t = hc
                row = pl.multiple_of(t * Bt, Bt)          # sublane-aligned offset
                g = xp_ref[pl.ds(row, Bt), :] + jnp.dot(
                    h_t, _w_hh, preferred_element_type=jnp.float32)
                g_i = jax.nn.sigmoid(g[:, 0 * H:1 * H])
                g_f = jax.nn.sigmoid(g[:, 1 * H:2 * H])
                g_g = jnp.tanh(g[:, 2 * H:3 * H])
                g_o = jax.nn.sigmoid(g[:, 3 * H:4 * H])
                c_n = g_f * c_t + g_i * g_g
                h_n = g_o * jnp.tanh(c_n)
                if not _last:
                    hseq_ref[pl.ds(row, Bt), :] = h_n     # feed next layer
                return (h_n, c_n)

            h, _ = lax.fori_loop(0, T, step, (h0, c0), unroll=unroll)

        # Fused final Linear(hidden, 1) on the last timestep of the last layer.
        out_ref[...] = (
            jnp.dot(h, w_fc_ref[...], preferred_element_type=jnp.float32)
            + b_fc_ref[...]
        )

    return kernel


# ----------------------------------------------------------------------------
# Wrapper
# ----------------------------------------------------------------------------
def _round_up(a, m):
    return (a + m - 1) // m * m


@jax.jit
def lstm_model_forward(x, params):
    """x: (B, T, input_size) -> (B, 1). Matches LSTMModel.forward (eval mode)."""
    B, T, I = x.shape
    layers = params["layers"]
    num_layers = len(layers)
    if num_layers < 1:
        raise ValueError("num_layers must be >= 1")
    H = layers[0]["w_hh_t"].shape[0]

    # Pad batch to the f32 sublane (8) and pick a batch tile for the grid.
    TILE_B = 128
    B_pad = _round_up(B, 8)
    if B_pad <= TILE_B:
        TILE_B = B_pad
    else:
        B_pad = _round_up(B_pad, TILE_B)
    grid = (B_pad // TILE_B,)

    x_tm = jnp.transpose(x, (1, 0, 2)).astype(jnp.float32)      # (T, B, I)
    if B_pad != B:
        x_tm = jnp.pad(x_tm, ((0, 0), (0, B_pad - B), (0, 0)))

    inputs = [x_tm]
    for lp in layers:
        inputs += [lp["w_ih_t"], lp["w_hh_t"], lp["bias"]]
    inputs += [params["w_fc_t"], params["b_fc"]]

    in_specs = [pl.BlockSpec((T, TILE_B, I), lambda b: (0, b, 0))]
    for lp in layers:
        in_specs += [
            pl.BlockSpec(lp["w_ih_t"].shape, lambda b: (0, 0)),
            pl.BlockSpec(lp["w_hh_t"].shape, lambda b: (0, 0)),
            pl.BlockSpec(lp["bias"].shape, lambda b: (0, 0)),
        ]
    in_specs += [
        pl.BlockSpec(params["w_fc_t"].shape, lambda b: (0, 0)),
        pl.BlockSpec(params["b_fc"].shape, lambda b: (0, 0)),
    ]
    out_spec = pl.BlockSpec((TILE_B, 1), lambda b: (b, 0))

    scratch_shapes = [
        pltpu.VMEM((T * TILE_B, 4 * H), jnp.float32),   # xp (input projections)
        pltpu.VMEM((T * TILE_B, H), jnp.float32),       # next-layer hidden seq
    ]

    # Scoped-VMEM budget: blocks (double-buffered across the batch grid) +
    # scratch + headroom; clamped to stay under physical VMEM on all chips.
    block_bytes = 4 * (T * TILE_B * I + TILE_B * 1)
    for lp in layers:
        block_bytes += 4 * (lp["w_ih_t"].size + lp["w_hh_t"].size + lp["bias"].size)
    block_bytes += 4 * (params["w_fc_t"].size + params["b_fc"].size)
    scratch_bytes = 4 * (T * TILE_B * 4 * H + T * TILE_B * H)
    vmem_limit = int(min(max(2 * block_bytes + scratch_bytes + (4 << 20), 32 << 20),
                         100 << 20))

    unroll = T if T <= 8 else 8                          # chunk-unrolled fori_loop
    kernel = _make_lstm_model_kernel(num_layers, T, TILE_B, I, H, unroll)

    out = pl.pallas_call(
        kernel,
        out_shape=jax.ShapeDtypeStruct((B_pad, 1), jnp.float32),
        grid=grid,
        in_specs=in_specs,
        out_specs=out_spec,
        scratch_shapes=scratch_shapes,
        compiler_params=pltpu.CompilerParams(
            dimension_semantics=("parallel",),
            vmem_limit_bytes=vmem_limit,
        ),
    )(*inputs)
    return out[:B]


# ----------------------------------------------------------------------------
# Parameters (PyTorch LSTM/Linear shapes & init range), kernel-friendly layout
# ----------------------------------------------------------------------------
def init_params(key, input_size, hidden_size, num_layers):
    H = hidden_size
    params = {"layers": []}
    bound = 1.0 / jnp.sqrt(jnp.float32(hidden_size))
    for layer in range(num_layers):
        in_sz = input_size if layer == 0 else hidden_size
        key, k1, k2, k3, k4 = jax.random.split(key, 5)
        w_ih = jax.random.uniform(k1, (4 * H, in_sz), jnp.float32, -bound, bound)
        w_hh = jax.random.uniform(k2, (4 * H, H), jnp.float32, -bound, bound)
        b_ih = jax.random.uniform(k3, (4 * H,), jnp.float32, -bound, bound)
        b_hh = jax.random.uniform(k4, (4 * H,), jnp.float32, -bound, bound)
        params["layers"].append(
            {
                "w_ih_t": w_ih.T,                            # (in, 4H)
                "w_hh_t": w_hh.T,                            # (H, 4H) gate-concat
                "bias": (b_ih + b_hh).reshape(1, 4 * H),     # (1, 4H)
            }
        )
    key, k5, k6 = jax.random.split(key, 3)
    w_fc = jax.random.uniform(k5, (1, hidden_size), jnp.float32, -bound, bound)
    b_fc = jax.random.uniform(k6, (1,), jnp.float32, -bound, bound)
    params["w_fc_t"] = w_fc.T                                # (H, 1)
    params["b_fc"] = b_fc.reshape(1, 1)                      # (1, 1)
    return params


# Pure-JAX reference (same math, no Pallas) for sanity checking.
def _reference_forward(x, params):
    hp = jax.lax.Precision.HIGHEST
    seq = jnp.transpose(x, (1, 0, 2)).astype(jnp.float32)    # (T, B, I)
    for lp in params["layers"]:
        T, B, _ = seq.shape
        H = lp["w_hh_t"].shape[0]
        h_t = jnp.zeros((B, H), jnp.float32)
        c_t = jnp.zeros((B, H), jnp.float32)
        outs = []
        for t in range(T):
            g = (jnp.dot(seq[t], lp["w_ih_t"], precision=hp) + lp["bias"]
                 + jnp.dot(h_t, lp["w_hh_t"], precision=hp))
            g_i = jax.nn.sigmoid(g[:, 0 * H:1 * H])
            g_f = jax.nn.sigmoid(g[:, 1 * H:2 * H])
            g_g = jnp.tanh(g[:, 2 * H:3 * H])
            g_o = jax.nn.sigmoid(g[:, 3 * H:4 * H])
            c_t = g_f * c_t + g_i * g_g
            h_t = g_o * jnp.tanh(c_t)
            outs.append(h_t)
        seq = jnp.stack(outs, axis=0)
    return jnp.dot(seq[-1], params["w_fc_t"], precision=hp) + params["b_fc"]


if __name__ == "__main__":
    B, T, INPUT, HIDDEN, N_LAYERS = 2, 8, 4, 32, 2

    key = jax.random.PRNGKey(0)
    key, kx = jax.random.split(key)
    x = jax.random.normal(kx, (B, T, INPUT), jnp.float32)
    params = init_params(key, INPUT, HIDDEN, N_LAYERS)

    out = lstm_model_forward(x, params)
    out = jax.block_until_ready(out)
    assert out.shape == (B, 1), out.shape

    ref = _reference_forward(x, params)
    assert jnp.allclose(out, ref, atol=1e-4, rtol=1e-4), (out, ref)

    print("KERNEL_OK")
</pallas_src>

<mosaic_0001>
module attributes {stable_mosaic.version = 11 : i64} {
  func.func @kernel(%arg0: i32, %arg1: memref<8x8x4xf32, #tpu.memory_space<vmem>>, %arg2: memref<4x128xf32, #tpu.memory_space<vmem>>, %arg3: memref<32x128xf32, #tpu.memory_space<vmem>>, %arg4: memref<1x128xf32, #tpu.memory_space<vmem>>, %arg5: memref<32x128xf32, #tpu.memory_space<vmem>>, %arg6: memref<32x128xf32, #tpu.memory_space<vmem>>, %arg7: memref<1x128xf32, #tpu.memory_space<vmem>>, %arg8: memref<32x1xf32, #tpu.memory_space<vmem>>, %arg9: memref<1x1xf32, #tpu.memory_space<vmem>>, %arg10: memref<8x1xf32, #tpu.memory_space<vmem>>, %arg11: memref<64x128xf32, #tpu.memory_space<vmem>>, %arg12: memref<64x32xf32, #tpu.memory_space<vmem>>) attributes {dimension_semantics = [#tpu.dimension_semantics<parallel>], iteration_bounds = array<i64: 1>, scalar_prefetch = 0 : i64, scratch_operands = 2 : i64, tpu.core_type = #tpu.core_type<tc>, window_params = [{transform_indices = @transform_0, window_bounds = array<i64: 8, 8, 4>}, {pipeline_mode = #tpu.pipeline_mode<synchronous>, transform_indices = @transform_1, window_bounds = array<i64: 4, 128>}, {pipeline_mode = #tpu.pipeline_mode<synchronous>, transform_indices = @transform_2, window_bounds = array<i64: 32, 128>}, {pipeline_mode = #tpu.pipeline_mode<synchronous>, transform_indices = @transform_3, window_bounds = array<i64: 1, 128>}, {pipeline_mode = #tpu.pipeline_mode<synchronous>, transform_indices = @transform_4, window_bounds = array<i64: 32, 128>}, {pipeline_mode = #tpu.pipeline_mode<synchronous>, transform_indices = @transform_5, window_bounds = array<i64: 32, 128>}, {pipeline_mode = #tpu.pipeline_mode<synchronous>, transform_indices = @transform_6, window_bounds = array<i64: 1, 128>}, {pipeline_mode = #tpu.pipeline_mode<synchronous>, transform_indices = @transform_7, window_bounds = array<i64: 32, 1>}, {pipeline_mode = #tpu.pipeline_mode<synchronous>, transform_indices = @transform_8, window_bounds = array<i64: 1, 1>}, {transform_indices = @transform_9, window_bounds = array<i64: 8, 1>}]} {
    %c0 = arith.constant 0 : index
    %c0_0 = arith.constant 0 : index
    %c0_1 = arith.constant 0 : index
    %0 = vector.load %arg1[%c0, %c0_0, %c0_1] : memref<8x8x4xf32, #tpu.memory_space<vmem>>, vector<8x8x4xf32>
    %1 = vector.shape_cast %0 : vector<8x8x4xf32> to vector<64x4xf32>
    %c0_2 = arith.constant 0 : index
    %c0_3 = arith.constant 0 : index
    %2 = vector.load %arg2[%c0_2, %c0_3] : memref<4x128xf32, #tpu.memory_space<vmem>>, vector<4x128xf32>
    %cst = arith.constant dense<0.000000e+00> : vector<64x128xf32>
    %3 = tpu.matmul %1, %2, %cst {dimension_numbers = #tpu.dot_dimension_numbers<[1], [0], [0], [1], [0, 0, 1, 1], [], []>} : vector<64x4xf32>, vector<4x128xf32>, vector<64x128xf32> -> vector<64x128xf32>
    %c0_4 = arith.constant 0 : index
    %c0_5 = arith.constant 0 : index
    %4 = vector.load %arg4[%c0_4, %c0_5] : memref<1x128xf32, #tpu.memory_space<vmem>>, vector<1x128xf32>
    %5 = vector.broadcast %4 : vector<1x128xf32> to vector<64x128xf32>
    %6 = arith.addf %3, %5 : vector<64x128xf32>
    %c0_6 = arith.constant 0 : index
    %c0_7 = arith.constant 0 : index
    %7 = vector.load %arg11[%c0_6, %c0_7] : memref<64x128xf32, #tpu.memory_space<vmem>>, vector<64x128xf32>
    tpu.vector_store %arg11[%c0_6, %c0_7], %6 {strides = array<i32>} : memref<64x128xf32, #tpu.memory_space<vmem>>, vector<64x128xf32>,
    %c0_8 = arith.constant 0 : index
    %c0_9 = arith.constant 0 : index
    %8 = vector.load %arg3[%c0_8, %c0_9] : memref<32x128xf32, #tpu.memory_space<vmem>>, vector<32x128xf32>
    %cst_10 = arith.constant 0.000000e+00 : f32
    %9 = vector.broadcast %cst_10 : f32 to vector<8x32xf32>
    %cst_11 = arith.constant 0.000000e+00 : f32
    %10 = vector.broadcast %cst_11 : f32 to vector<8x32xf32>
    %c0_i32 = arith.constant 0 : i32
    %c8_i32 = arith.constant 8 : i32
    %11 = arith.muli %c0_i32, %c8_i32 : i32
    %12 = tpu.assume_multiple %11, 8 : i32
    %13 = arith.index_cast %12 : i32 to index
    %c0_12 = arith.constant 0 : index
    %14 = vector.load %arg11[%13, %c0_12] : memref<64x128xf32, #tpu.memory_space<vmem>>, vector<8x128xf32>
    %cst_13 = arith.constant dense<0.000000e+00> : vector<8x128xf32>
    %15 = tpu.matmul %9, %8, %cst_13 {dimension_numbers = #tpu.dot_dimension_numbers<[1], [0], [0], [1], [0, 0, 1, 1], [], []>} : vector<8x32xf32>, vector<32x128xf32>, vector<8x128xf32> -> vector<8x128xf32>
    %16 = arith.addf %14, %15 : vector<8x128xf32>
    %17 = vector.extract_strided_slice %16 {offsets = [0, 0], sizes = [8, 32], strides = [1, 1]} : vector<8x128xf32> to vector<8x32xf32>
    %18 = arith.negf %17 : vector<8x32xf32>
    %19 = math.exp %18 : vector<8x32xf32>
    %cst_14 = arith.constant 1.000000e+00 : f32
    %20 = vector.broadcast %cst_14 : f32 to vector<8x32xf32>
    %21 = arith.addf %20, %19 : vector<8x32xf32>
    %22 = arith.divf %20, %21 : vector<8x32xf32>
    %23 = vector.extract_strided_slice %16 {offsets = [0, 32], sizes = [8, 32], strides = [1, 1]} : vector<8x128xf32> to vector<8x32xf32>
    %24 = arith.negf %23 : vector<8x32xf32>
    %25 = math.exp %24 : vector<8x32xf32>
    %cst_15 = arith.constant 1.000000e+00 : f32
    %26 = vector.broadcast %cst_15 : f32 to vector<8x32xf32>
    %27 = arith.addf %26, %25 : vector<8x32xf32>
    %28 = arith.divf %26, %27 : vector<8x32xf32>
    %29 = vector.extract_strided_slice %16 {offsets = [0, 64], sizes = [8, 32], strides = [1, 1]} : vector<8x128xf32> to vector<8x32xf32>
    %30 = math.tanh %29 : vector<8x32xf32>
    %31 = vector.extract_strided_slice %16 {offsets = [0, 96], sizes = [8, 32], strides = [1, 1]} : vector<8x128xf32> to vector<8x32xf32>
    %32 = arith.negf %31 : vector<8x32xf32>
    %33 = math.exp %32 : vector<8x32xf32>
    %cst_16 = arith.constant 1.000000e+00 : f32
    %34 = vector.broadcast %cst_16 : f32 to vector<8x32xf32>
    %35 = arith.addf %34, %33 : vector<8x32xf32>
    %36 = arith.divf %34, %35 : vector<8x32xf32>
    %37 = arith.mulf %28, %10 : vector<8x32xf32>
    %38 = arith.mulf %22, %30 : vector<8x32xf32>
    %39 = arith.addf %37, %38 : vector<8x32xf32>
    %40 = math.tanh %39 : vector<8x32xf32>
    %41 = arith.mulf %36, %40 : vector<8x32xf32>
    %42 = arith.index_cast %12 : i32 to index
    %c0_17 = arith.constant 0 : index
    %43 = vector.load %arg12[%42, %c0_17] : memref<64x32xf32, #tpu.memory_space<vmem>>, vector<8x32xf32>
    tpu.vector_store %arg12[%42, %c0_17], %41 {strides = array<i32>} : memref<64x32xf32, #tpu.memory_space<vmem>>, vector<8x32xf32>,
    %c1_i32 = arith.constant 1 : i32
    %c8_i32_18 = arith.constant 8 : i32
    %44 = arith.muli %c1_i32, %c8_i32_18 : i32
    %45 = tpu.assume_multiple %44, 8 : i32
    %46 = arith.index_cast %45 : i32 to index
    %c0_19 = arith.constant 0 : index
    %47 = vector.load %arg11[%46, %c0_19] : memref<64x128xf32, #tpu.memory_space<vmem>>, vector<8x128xf32>
    %cst_20 = arith.constant dense<0.000000e+00> : vector<8x128xf32>
    %48 = tpu.matmul %41, %8, %cst_20 {dimension_numbers = #tpu.dot_dimension_numbers<[1], [0], [0], [1], [0, 0, 1, 1], [], []>} : vector<8x32xf32>, vector<32x128xf32>, vector<8x128xf32> -> vector<8x128xf32>
    %49 = arith.addf %47, %48 : vector<8x128xf32>
    %50 = vector.extract_strided_slice %49 {offsets = [0, 0], sizes = [8, 32], strides = [1, 1]} : vector<8x128xf32> to vector<8x32xf32>
    %51 = arith.negf %50 : vector<8x32xf32>
    %52 = math.exp %51 : vector<8x32xf32>
    %cst_21 = arith.constant 1.000000e+00 : f32
    %53 = vector.broadcast %cst_21 : f32 to vector<8x32xf32>
    %54 = arith.addf %53, %52 : vector<8x32xf32>
    %55 = arith.divf %53, %54 : vector<8x32xf32>
    %56 = vector.extract_strided_slice %49 {offsets = [0, 32], sizes = [8, 32], strides = [1, 1]} : vector<8x128xf32> to vector<8x32xf32>
    %57 = arith.negf %56 : vector<8x32xf32>
    %58 = math.exp %57 : vector<8x32xf32>
    %cst_22 = arith.constant 1.000000e+00 : f32
    %59 = vector.broadcast %cst_22 : f32 to vector<8x32xf32>
    %60 = arith.addf %59, %58 : vector<8x32xf32>
    %61 = arith.divf %59, %60 : vector<8x32xf32>
    %62 = vector.extract_strided_slice %49 {offsets = [0, 64], sizes = [8, 32], strides = [1, 1]} : vector<8x128xf32> to vector<8x32xf32>
    %63 = math.tanh %62 : vector<8x32xf32>
    %64 = vector.extract_strided_slice %49 {offsets = [0, 96], sizes = [8, 32], strides = [1, 1]} : vector<8x128xf32> to vector<8x32xf32>
    %65 = arith.negf %64 : vector<8x32xf32>
    %66 = math.exp %65 : vector<8x32xf32>
    %cst_23 = arith.constant 1.000000e+00 : f32
    %67 = vector.broadcast %cst_23 : f32 to vector<8x32xf32>
    %68 = arith.addf %67, %66 : vector<8x32xf32>
    %69 = arith.divf %67, %68 : vector<8x32xf32>
    %70 = arith.mulf %61, %39 : vector<8x32xf32>
    %71 = arith.mulf %55, %63 : vector<8x32xf32>
    %72 = arith.addf %70, %71 : vector<8x32xf32>
    %73 = math.tanh %72 : vector<8x32xf32>
    %74 = arith.mulf %69, %73 : vector<8x32xf32>
    %75 = arith.index_cast %45 : i32 to index
    %c0_24 = arith.constant 0 : index
    %76 = vector.load %arg12[%75, %c0_24] : memref<64x32xf32, #tpu.memory_space<vmem>>, vector<8x32xf32>
    tpu.vector_store %arg12[%75, %c0_24], %74 {strides = array<i32>} : memref<64x32xf32, #tpu.memory_space<vmem>>, vector<8x32xf32>,
    %c2_i32 = arith.constant 2 : i32
    %c8_i32_25 = arith.constant 8 : i32
    %77 = arith.muli %c2_i32, %c8_i32_25 : i32
    %78 = tpu.assume_multiple %77, 8 : i32
    %79 = arith.index_cast %78 : i32 to index
    %c0_26 = arith.constant 0 : index
    %80 = vector.load %arg11[%79, %c0_26] : memref<64x128xf32, #tpu.memory_space<vmem>>, vector<8x128xf32>
    %cst_27 = arith.constant dense<0.000000e+00> : vector<8x128xf32>
    %81 = tpu.matmul %74, %8, %cst_27 {dimension_numbers = #tpu.dot_dimension_numbers<[1], [0], [0], [1], [0, 0, 1, 1], [], []>} : vector<8x32xf32>, vector<32x128xf32>, vector<8x128xf32> -> vector<8x128xf32>
    %82 = arith.addf %80, %81 : vector<8x128xf32>
    %83 = vector.extract_strided_slice %82 {offsets = [0, 0], sizes = [8, 32], strides = [1, 1]} : vector<8x128xf32> to vector<8x32xf32>
    %84 = arith.negf %83 : vector<8x32xf32>
    %85 = math.exp %84 : vector<8x32xf32>
    %cst_28 = arith.constant 1.000000e+00 : f32
    %86 = vector.broadcast %cst_28 : f32 to vector<8x32xf32>
    %87 = arith.addf %86, %85 : vector<8x32xf32>
    %88 = arith.divf %86, %87 : vector<8x32xf32>
    %89 = vector.extract_strided_slice %82 {offsets = [0, 32], sizes = [8, 32], strides = [1, 1]} : vector<8x128xf32> to vector<8x32xf32>
    %90 = arith.negf %89 : vector<8x32xf32>
    %91 = math.exp %90 : vector<8x32xf32>
    %cst_29 = arith.constant 1.000000e+00 : f32
    %92 = vector.broadcast %cst_29 : f32 to vector<8x32xf32>
    %93 = arith.addf %92, %91 : vector<8x32xf32>
    %94 = arith.divf %92, %93 : vector<8x32xf32>
    %95 = vector.extract_strided_slice %82 {offsets = [0, 64], sizes = [8, 32], strides = [1, 1]} : vector<8x128xf32> to vector<8x32xf32>
    %96 = math.tanh %95 : vector<8x32xf32>
    %97 = vector.extract_strided_slice %82 {offsets = [0, 96], sizes = [8, 32], strides = [1, 1]} : vector<8x128xf32> to vector<8x32xf32>
    %98 = arith.negf %97 : vector<8x32xf32>
    %99 = math.exp %98 : vector<8x32xf32>
    %cst_30 = arith.constant 1.000000e+00 : f32
    %100 = vector.broadcast %cst_30 : f32 to vector<8x32xf32>
    %101 = arith.addf %100, %99 : vector<8x32xf32>
    %102 = arith.divf %100, %101 : vector<8x32xf32>
    %103 = arith.mulf %94, %72 : vector<8x32xf32>
    %104 = arith.mulf %88, %96 : vector<8x32xf32>
    %105 = arith.addf %103, %104 : vector<8x32xf32>
    %106 = math.tanh %105 : vector<8x32xf32>
    %107 = arith.mulf %102, %106 : vector<8x32xf32>
    %108 = arith.index_cast %78 : i32 to index
    %c0_31 = arith.constant 0 : index
    %109 = vector.load %arg12[%108, %c0_31] : memref<64x32xf32, #tpu.memory_space<vmem>>, vector<8x32xf32>
    tpu.vector_store %arg12[%108, %c0_31], %107 {strides = array<i32>} : memref<64x32xf32, #tpu.memory_space<vmem>>, vector<8x32xf32>,
    %c3_i32 = arith.constant 3 : i32
    %c8_i32_32 = arith.constant 8 : i32
    %110 = arith.muli %c3_i32, %c8_i32_32 : i32
    %111 = tpu.assume_multiple %110, 8 : i32
    %112 = arith.index_cast %111 : i32 to index
    %c0_33 = arith.constant 0 : index
    %113 = vector.load %arg11[%112, %c0_33] : memref<64x128xf32, #tpu.memory_space<vmem>>, vector<8x128xf32>
    %cst_34 = arith.constant dense<0.000000e+00> : vector<8x128xf32>
    %114 = tpu.matmul %107, %8, %cst_34 {dimension_numbers = #tpu.dot_dimension_numbers<[1], [0], [0], [1], [0, 0, 1, 1], [], []>} : vector<8x32xf32>, vector<32x128xf32>, vector<8x128xf32> -> vector<8x128xf32>
    %115 = arith.addf %113, %114 : vector<8x128xf32>
    %116 = vector.extract_strided_slice %115 {offsets = [0, 0], sizes = [8, 32], strides = [1, 1]} : vector<8x128xf32> to vector<8x32xf32>
    %117 = arith.negf %116 : vector<8x32xf32>
    %118 = math.exp %117 : vector<8x32xf32>
    %cst_35 = arith.constant 1.000000e+00 : f32
    %119 = vector.broadcast %cst_35 : f32 to vector<8x32xf32>
    %120 = arith.addf %119, %118 : vector<8x32xf32>
    %121 = arith.divf %119, %120 : vector<8x32xf32>
    %122 = vector.extract_strided_slice %115 {offsets = [0, 32], sizes = [8, 32], strides = [1, 1]} : vector<8x128xf32> to vector<8x32xf32>
    %123 = arith.negf %122 : vector<8x32xf32>
    %124 = math.exp %123 : vector<8x32xf32>
    %cst_36 = arith.constant 1.000000e+00 : f32
    %125 = vector.broadcast %cst_36 : f32 to vector<8x32xf32>
    %126 = arith.addf %125, %124 : vector<8x32xf32>
    %127 = arith.divf %125, %126 : vector<8x32xf32>
    %128 = vector.extract_strided_slice %115 {offsets = [0, 64], sizes = [8, 32], strides = [1, 1]} : vector<8x128xf32> to vector<8x32xf32>
    %129 = math.tanh %128 : vector<8x32xf32>
    %130 = vector.extract_strided_slice %115 {offsets = [0, 96], sizes = [8, 32], strides = [1, 1]} : vector<8x128xf32> to vector<8x32xf32>
    %131 = arith.negf %130 : vector<8x32xf32>
    %132 = math.exp %131 : vector<8x32xf32>
    %cst_37 = arith.constant 1.000000e+00 : f32
    %133 = vector.broadcast %cst_37 : f32 to vector<8x32xf32>
    %134 = arith.addf %133, %132 : vector<8x32xf32>
    %135 = arith.divf %133, %134 : vector<8x32xf32>
    %136 = arith.mulf %127, %105 : vector<8x32xf32>
    %137 = arith.mulf %121, %129 : vector<8x32xf32>
    %138 = arith.addf %136, %137 : vector<8x32xf32>
    %139 = math.tanh %138 : vector<8x32xf32>
    %140 = arith.mulf %135, %139 : vector<8x32xf32>
    %141 = arith.index_cast %111 : i32 to index
    %c0_38 = arith.constant 0 : index
    %142 = vector.load %arg12[%141, %c0_38] : memref<64x32xf32, #tpu.memory_space<vmem>>, vector<8x32xf32>
    tpu.vector_store %arg12[%141, %c0_38], %140 {strides = array<i32>} : memref<64x32xf32, #tpu.memory_space<vmem>>, vector<8x32xf32>,
    %c4_i32 = arith.constant 4 : i32
    %c8_i32_39 = arith.constant 8 : i32
    %143 = arith.muli %c4_i32, %c8_i32_39 : i32
    %144 = tpu.assume_multiple %143, 8 : i32
    %145 = arith.index_cast %144 : i32 to index
    %c0_40 = arith.constant 0 : index
    %146 = vector.load %arg11[%145, %c0_40] : memref<64x128xf32, #tpu.memory_space<vmem>>, vector<8x128xf32>
    %cst_41 = arith.constant dense<0.000000e+00> : vector<8x128xf32>
    %147 = tpu.matmul %140, %8, %cst_41 {dimension_numbers = #tpu.dot_dimension_numbers<[1], [0], [0], [1], [0, 0, 1, 1], [], []>} : vector<8x32xf32>, vector<32x128xf32>, vector<8x128xf32> -> vector<8x128xf32>
    %148 = arith.addf %146, %147 : vector<8x128xf32>
    %149 = vector.extract_strided_slice %148 {offsets = [0, 0], sizes = [8, 32], strides = [1, 1]} : vector<8x128xf32> to vector<8x32xf32>
    %150 = arith.negf %149 : vector<8x32xf32>
    %151 = math.exp %150 : vector<8x32xf32>
    %cst_42 = arith.constant 1.000000e+00 : f32
    %152 = vector.broadcast %cst_42 : f32 to vector<8x32xf32>
    %153 = arith.addf %152, %151 : vector<8x32xf32>
    %154 = arith.divf %152, %153 : vector<8x32xf32>
    %155 = vector.extract_strided_slice %148 {offsets = [0, 32], sizes = [8, 32], strides = [1, 1]} : vector<8x128xf32> to vector<8x32xf32>
    %156 = arith.negf %155 : vector<8x32xf32>
    %157 = math.exp %156 : vector<8x32xf32>
    %cst_43 = arith.constant 1.000000e+00 : f32
    %158 = vector.broadcast %cst_43 : f32 to vector<8x32xf32>
    %159 = arith.addf %158, %157 : vector<8x32xf32>
    %160 = arith.divf %158, %159 : vector<8x32xf32>
    %161 = vector.extract_strided_slice %148 {offsets = [0, 64], sizes = [8, 32], strides = [1, 1]} : vector<8x128xf32> to vector<8x32xf32>
    %162 = math.tanh %161 : vector<8x32xf32>
    %163 = vector.extract_strided_slice %148 {offsets = [0, 96], sizes = [8, 32], strides = [1, 1]} : vector<8x128xf32> to vector<8x32xf32>
    %164 = arith.negf %163 : vector<8x32xf32>
    %165 = math.exp %164 : vector<8x32xf32>
    %cst_44 = arith.constant 1.000000e+00 : f32
    %166 = vector.broadcast %cst_44 : f32 to vector<8x32xf32>
    %167 = arith.addf %166, %165 : vector<8x32xf32>
    %168 = arith.divf %166, %167 : vector<8x32xf32>
    %169 = arith.mulf %160, %138 : vector<8x32xf32>
    %170 = arith.mulf %154, %162 : vector<8x32xf32>
    %171 = arith.addf %169, %170 : vector<8x32xf32>
    %172 = math.tanh %171 : vector<8x32xf32>
    %173 = arith.mulf %168, %172 : vector<8x32xf32>
    %174 = arith.index_cast %144 : i32 to index
    %c0_45 = arith.constant 0 : index
    %175 = vector.load %arg12[%174, %c0_45] : memref<64x32xf32, #tpu.memory_space<vmem>>, vector<8x32xf32>
    tpu.vector_store %arg12[%174, %c0_45], %173 {strides = array<i32>} : memref<64x32xf32, #tpu.memory_space<vmem>>, vector<8x32xf32>,
    %c5_i32 = arith.constant 5 : i32
    %c8_i32_46 = arith.constant 8 : i32
    %176 = arith.muli %c5_i32, %c8_i32_46 : i32
    %177 = tpu.assume_multiple %176, 8 : i32
    %178 = arith.index_cast %177 : i32 to index
    %c0_47 = arith.constant 0 : index
    %179 = vector.load %arg11[%178, %c0_47] : memref<64x128xf32, #tpu.memory_space<vmem>>, vector<8x128xf32>
    %cst_48 = arith.constant dense<0.000000e+00> : vector<8x128xf32>
    %180 = tpu.matmul %173, %8, %cst_48 {dimension_numbers = #tpu.dot_dimension_numbers<[1], [0], [0], [1], [0, 0, 1, 1], [], []>} : vector<8x32xf32>, vector<32x128xf32>, vector<8x128xf32> -> vector<8x128xf32>
    %181 = arith.addf %179, %180 : vector<8x128xf32>
    %182 = vector.extract_strided_slice %181 {offsets = [0, 0], sizes = [8, 32], strides = [1, 1]} : vector<8x128xf32> to vector<8x32xf32>
    %183 = arith.negf %182 : vector<8x32xf32>
    %184 = math.exp %183 : vector<8x32xf32>
    %cst_49 = arith.constant 1.000000e+00 : f32
    %185 = vector.broadcast %cst_49 : f32 to vector<8x32xf32>
    %186 = arith.addf %185, %184 : vector<8x32xf32>
    %187 = arith.divf %185, %186 : vector<8x32xf32>
    %188 = vector.extract_strided_slice %181 {offsets = [0, 32], sizes = [8, 32], strides = [1, 1]} : vector<8x128xf32> to vector<8x32xf32>
    %189 = arith.negf %188 : vector<8x32xf32>
    %190 = math.exp %189 : vector<8x32xf32>
    %cst_50 = arith.constant 1.000000e+00 : f32
    %191 = vector.broadcast %cst_50 : f32 to vector<8x32xf32>
    %192 = arith.addf %191, %190 : vector<8x32xf32>
    %193 = arith.divf %191, %192 : vector<8x32xf32>
    %194 = vector.extract_strided_slice %181 {offsets = [0, 64], sizes = [8, 32], strides = [1, 1]} : vector<8x128xf32> to vector<8x32xf32>
    %195 = math.tanh %194 : vector<8x32xf32>
    %196 = vector.extract_strided_slice %181 {offsets = [0, 96], sizes = [8, 32], strides = [1, 1]} : vector<8x128xf32> to vector<8x32xf32>
    %197 = arith.negf %196 : vector<8x32xf32>
    %198 = math.exp %197 : vector<8x32xf32>
    %cst_51 = arith.constant 1.000000e+00 : f32
    %199 = vector.broadcast %cst_51 : f32 to vector<8x32xf32>
    %200 = arith.addf %199, %198 : vector<8x32xf32>
    %201 = arith.divf %199, %200 : vector<8x32xf32>
    %202 = arith.mulf %193, %171 : vector<8x32xf32>
    %203 = arith.mulf %187, %195 : vector<8x32xf32>
    %204 = arith.addf %202, %203 : vector<8x32xf32>
    %205 = math.tanh %204 : vector<8x32xf32>
    %206 = arith.mulf %201, %205 : vector<8x32xf32>
    %207 = arith.index_cast %177 : i32 to index
    %c0_52 = arith.constant 0 : index
    %208 = vector.load %arg12[%207, %c0_52] : memref<64x32xf32, #tpu.memory_space<vmem>>, vector<8x32xf32>
    tpu.vector_store %arg12[%207, %c0_52], %206 {strides = array<i32>} : memref<64x32xf32, #tpu.memory_space<vmem>>, vector<8x32xf32>,
    %c6_i32 = arith.constant 6 : i32
    %c8_i32_53 = arith.constant 8 : i32
    %209 = arith.muli %c6_i32, %c8_i32_53 : i32
    %210 = tpu.assume_multiple %209, 8 : i32
    %211 = arith.index_cast %210 : i32 to index
    %c0_54 = arith.constant 0 : index
    %212 = vector.load %arg11[%211, %c0_54] : memref<64x128xf32, #tpu.memory_space<vmem>>, vector<8x128xf32>
    %cst_55 = arith.constant dense<0.000000e+00> : vector<8x128xf32>
    %213 = tpu.matmul %206, %8, %cst_55 {dimension_numbers = #tpu.dot_dimension_numbers<[1], [0], [0], [1], [0, 0, 1, 1], [], []>} : vector<8x32xf32>, vector<32x128xf32>, vector<8x128xf32> -> vector<8x128xf32>
    %214 = arith.addf %212, %213 : vector<8x128xf32>
    %215 = vector.extract_strided_slice %214 {offsets = [0, 0], sizes = [8, 32], strides = [1, 1]} : vector<8x128xf32> to vector<8x32xf32>
    %216 = arith.negf %215 : vector<8x32xf32>
    %217 = math.exp %216 : vector<8x32xf32>
    %cst_56 = arith.constant 1.000000e+00 : f32
    %218 = vector.broadcast %cst_56 : f32 to vector<8x32xf32>
    %219 = arith.addf %218, %217 : vector<8x32xf32>
    %220 = arith.divf %218, %219 : vector<8x32xf32>
    %221 = vector.extract_strided_slice %214 {offsets = [0, 32], sizes = [8, 32], strides = [1, 1]} : vector<8x128xf32> to vector<8x32xf32>
    %222 = arith.negf %221 : vector<8x32xf32>
    %223 = math.exp %222 : vector<8x32xf32>
    %cst_57 = arith.constant 1.000000e+00 : f32
    %224 = vector.broadcast %cst_57 : f32 to vector<8x32xf32>
    %225 = arith.addf %224, %223 : vector<8x32xf32>
    %226 = arith.divf %224, %225 : vector<8x32xf32>
    %227 = vector.extract_strided_slice %214 {offsets = [0, 64], sizes = [8, 32], strides = [1, 1]} : vector<8x128xf32> to vector<8x32xf32>
    %228 = math.tanh %227 : vector<8x32xf32>
    %229 = vector.extract_strided_slice %214 {offsets = [0, 96], sizes = [8, 32], strides = [1, 1]} : vector<8x128xf32> to vector<8x32xf32>
    %230 = arith.negf %229 : vector<8x32xf32>
    %231 = math.exp %230 : vector<8x32xf32>
    %cst_58 = arith.constant 1.000000e+00 : f32
    %232 = vector.broadcast %cst_58 : f32 to vector<8x32xf32>
    %233 = arith.addf %232, %231 : vector<8x32xf32>
    %234 = arith.divf %232, %233 : vector<8x32xf32>
    %235 = arith.mulf %226, %204 : vector<8x32xf32>
    %236 = arith.mulf %220, %228 : vector<8x32xf32>
    %237 = arith.addf %235, %236 : vector<8x32xf32>
    %238 = math.tanh %237 : vector<8x32xf32>
    %239 = arith.mulf %234, %238 : vector<8x32xf32>
    %240 = arith.index_cast %210 : i32 to index
    %c0_59 = arith.constant 0 : index
    %241 = vector.load %arg12[%240, %c0_59] : memref<64x32xf32, #tpu.memory_space<vmem>>, vector<8x32xf32>
    tpu.vector_store %arg12[%240, %c0_59], %239 {strides = array<i32>} : memref<64x32xf32, #tpu.memory_space<vmem>>, vector<8x32xf32>,
    %c7_i32 = arith.constant 7 : i32
    %c8_i32_60 = arith.constant 8 : i32
    %242 = arith.muli %c7_i32, %c8_i32_60 : i32
    %243 = tpu.assume_multiple %242, 8 : i32
    %244 = arith.index_cast %243 : i32 to index
    %c0_61 = arith.constant 0 : index
    %245 = vector.load %arg11[%244, %c0_61] : memref<64x128xf32, #tpu.memory_space<vmem>>, vector<8x128xf32>
    %cst_62 = arith.constant dense<0.000000e+00> : vector<8x128xf32>
    %246 = tpu.matmul %239, %8, %cst_62 {dimension_numbers = #tpu.dot_dimension_numbers<[1], [0], [0], [1], [0, 0, 1, 1], [], []>} : vector<8x32xf32>, vector<32x128xf32>, vector<8x128xf32> -> vector<8x128xf32>
    %247 = arith.addf %245, %246 : vector<8x128xf32>
    %248 = vector.extract_strided_slice %247 {offsets = [0, 0], sizes = [8, 32], strides = [1, 1]} : vector<8x128xf32> to vector<8x32xf32>
    %249 = arith.negf %248 : vector<8x32xf32>
    %250 = math.exp %249 : vector<8x32xf32>
    %cst_63 = arith.constant 1.000000e+00 : f32
    %251 = vector.broadcast %cst_63 : f32 to vector<8x32xf32>
    %252 = arith.addf %251, %250 : vector<8x32xf32>
    %253 = arith.divf %251, %252 : vector<8x32xf32>
    %254 = vector.extract_strided_slice %247 {offsets = [0, 32], sizes = [8, 32], strides = [1, 1]} : vector<8x128xf32> to vector<8x32xf32>
    %255 = arith.negf %254 : vector<8x32xf32>
    %256 = math.exp %255 : vector<8x32xf32>
    %cst_64 = arith.constant 1.000000e+00 : f32
    %257 = vector.broadcast %cst_64 : f32 to vector<8x32xf32>
    %258 = arith.addf %257, %256 : vector<8x32xf32>
    %259 = arith.divf %257, %258 : vector<8x32xf32>
    %260 = vector.extract_strided_slice %247 {offsets = [0, 64], sizes = [8, 32], strides = [1, 1]} : vector<8x128xf32> to vector<8x32xf32>
    %261 = math.tanh %260 : vector<8x32xf32>
    %262 = vector.extract_strided_slice %247 {offsets = [0, 96], sizes = [8, 32], strides = [1, 1]} : vector<8x128xf32> to vector<8x32xf32>
    %263 = arith.negf %262 : vector<8x32xf32>
    %264 = math.exp %263 : vector<8x32xf32>
    %cst_65 = arith.constant 1.000000e+00 : f32
    %265 = vector.broadcast %cst_65 : f32 to vector<8x32xf32>
    %266 = arith.addf %265, %264 : vector<8x32xf32>
    %267 = arith.divf %265, %266 : vector<8x32xf32>
    %268 = arith.mulf %259, %237 : vector<8x32xf32>
    %269 = arith.mulf %253, %261 : vector<8x32xf32>
    %270 = arith.addf %268, %269 : vector<8x32xf32>
    %271 = math.tanh %270 : vector<8x32xf32>
    %272 = arith.mulf %267, %271 : vector<8x32xf32>
    %273 = arith.index_cast %243 : i32 to index
    %c0_66 = arith.constant 0 : index
    %274 = vector.load %arg12[%273, %c0_66] : memref<64x32xf32, #tpu.memory_space<vmem>>, vector<8x32xf32>
    tpu.vector_store %arg12[%273, %c0_66], %272 {strides = array<i32>} : memref<64x32xf32, #tpu.memory_space<vmem>>, vector<8x32xf32>,
    %c8_i32_67 = arith.constant 8 : i32
    %c0_68 = arith.constant 0 : index
    %c0_69 = arith.constant 0 : index
    %275 = vector.load %arg12[%c0_68, %c0_69] : memref<64x32xf32, #tpu.memory_space<vmem>>, vector<64x32xf32>
    %c0_70 = arith.constant 0 : index
    %c0_71 = arith.constant 0 : index
    %276 = vector.load %arg5[%c0_70, %c0_71] : memref<32x128xf32, #tpu.memory_space<vmem>>, vector<32x128xf32>
    %cst_72 = arith.constant dense<0.000000e+00> : vector<64x128xf32>
    %277 = tpu.matmul %275, %276, %cst_72 {dimension_numbers = #tpu.dot_dimension_numbers<[1], [0], [0], [1], [0, 0, 1, 1], [], []>} : vector<64x32xf32>, vector<32x128xf32>, vector<64x128xf32> -> vector<64x128xf32>
    %c0_73 = arith.constant 0 : index
    %c0_74 = arith.constant 0 : index
    %278 = vector.load %arg7[%c0_73, %c0_74] : memref<1x128xf32, #tpu.memory_space<vmem>>, vector<1x128xf32>
    %279 = vector.broadcast %278 : vector<1x128xf32> to vector<64x128xf32>
    %280 = arith.addf %277, %279 : vector<64x128xf32>
    %c0_75 = arith.constant 0 : index
    %c0_76 = arith.constant 0 : index
    %281 = vector.load %arg11[%c0_75, %c0_76] : memref<64x128xf32, #tpu.memory_space<vmem>>, vector<64x128xf32>
    tpu.vector_store %arg11[%c0_75, %c0_76], %280 {strides = array<i32>} : memref<64x128xf32, #tpu.memory_space<vmem>>, vector<64x128xf32>,
    %c0_77 = arith.constant 0 : index
    %c0_78 = arith.constant 0 : index
    %282 = vector.load %arg6[%c0_77, %c0_78] : memref<32x128xf32, #tpu.memory_space<vmem>>, vector<32x128xf32>
    %cst_79 = arith.constant 0.000000e+00 : f32
    %283 = vector.broadcast %cst_79 : f32 to vector<8x32xf32>
    %cst_80 = arith.constant 0.000000e+00 : f32
    %284 = vector.broadcast %cst_80 : f32 to vector<8x32xf32>
    %c0_i32_81 = arith.constant 0 : i32
    %c8_i32_82 = arith.constant 8 : i32
    %285 = arith.muli %c0_i32_81, %c8_i32_82 : i32
    %286 = tpu.assume_multiple %285, 8 : i32
    %287 = arith.index_cast %286 : i32 to index
    %c0_83 = arith.constant 0 : index
    %288 = vector.load %arg11[%287, %c0_83] : memref<64x128xf32, #tpu.memory_space<vmem>>, vector<8x128xf32>
    %cst_84 = arith.constant dense<0.000000e+00> : vector<8x128xf32>
    %289 = tpu.matmul %283, %282, %cst_84 {dimension_numbers = #tpu.dot_dimension_numbers<[1], [0], [0], [1], [0, 0, 1, 1], [], []>} : vector<8x32xf32>, vector<32x128xf32>, vector<8x128xf32> -> vector<8x128xf32>
    %290 = arith.addf %288, %289 : vector<8x128xf32>
    %291 = vector.extract_strided_slice %290 {offsets = [0, 0], sizes = [8, 32], strides = [1, 1]} : vector<8x128xf32> to vector<8x32xf32>
    %292 = arith.negf %291 : vector<8x32xf32>
    %293 = math.exp %292 : vector<8x32xf32>
    %cst_85 = arith.constant 1.000000e+00 : f32
    %294 = vector.broadcast %cst_85 : f32 to vector<8x32xf32>
    %295 = arith.addf %294, %293 : vector<8x32xf32>
    %296 = arith.divf %294, %295 : vector<8x32xf32>
    %297 = vector.extract_strided_slice %290 {offsets = [0, 32], sizes = [8, 32], strides = [1, 1]} : vector<8x128xf32> to vector<8x32xf32>
    %298 = arith.negf %297 : vector<8x32xf32>
    %299 = math.exp %298 : vector<8x32xf32>
    %cst_86 = arith.constant 1.000000e+00 : f32
    %300 = vector.broadcast %cst_86 : f32 to vector<8x32xf32>
    %301 = arith.addf %300, %299 : vector<8x32xf32>
    %302 = arith.divf %300, %301 : vector<8x32xf32>
    %303 = vector.extract_strided_slice %290 {offsets = [0, 64], sizes = [8, 32], strides = [1, 1]} : vector<8x128xf32> to vector<8x32xf32>
    %304 = math.tanh %303 : vector<8x32xf32>
    %305 = vector.extract_strided_slice %290 {offsets = [0, 96], sizes = [8, 32], strides = [1, 1]} : vector<8x128xf32> to vector<8x32xf32>
    %306 = arith.negf %305 : vector<8x32xf32>
    %307 = math.exp %306 : vector<8x32xf32>
    %cst_87 = arith.constant 1.000000e+00 : f32
    %308 = vector.broadcast %cst_87 : f32 to vector<8x32xf32>
    %309 = arith.addf %308, %307 : vector<8x32xf32>
    %310 = arith.divf %308, %309 : vector<8x32xf32>
    %311 = arith.mulf %302, %284 : vector<8x32xf32>
    %312 = arith.mulf %296, %304 : vector<8x32xf32>
    %313 = arith.addf %311, %312 : vector<8x32xf32>
    %314 = math.tanh %313 : vector<8x32xf32>
    %315 = arith.mulf %310, %314 : vector<8x32xf32>
    %c1_i32_88 = arith.constant 1 : i32
    %c8_i32_89 = arith.constant 8 : i32
    %316 = arith.muli %c1_i32_88, %c8_i32_89 : i32
    %317 = tpu.assume_multiple %316, 8 : i32
    %318 = arith.index_cast %317 : i32 to index
    %c0_90 = arith.constant 0 : index
    %319 = vector.load %arg11[%318, %c0_90] : memref<64x128xf32, #tpu.memory_space<vmem>>, vector<8x128xf32>
    %cst_91 = arith.constant dense<0.000000e+00> : vector<8x128xf32>
    %320 = tpu.matmul %315, %282, %cst_91 {dimension_numbers = #tpu.dot_dimension_numbers<[1], [0], [0], [1], [0, 0, 1, 1], [], []>} : vector<8x32xf32>, vector<32x128xf32>, vector<8x128xf32> -> vector<8x128xf32>
    %321 = arith.addf %319, %320 : vector<8x128xf32>
    %322 = vector.extract_strided_slice %321 {offsets = [0, 0], sizes = [8, 32], strides = [1, 1]} : vector<8x128xf32> to vector<8x32xf32>
    %323 = arith.negf %322 : vector<8x32xf32>
    %324 = math.exp %323 : vector<8x32xf32>
    %cst_92 = arith.constant 1.000000e+00 : f32
    %325 = vector.broadcast %cst_92 : f32 to vector<8x32xf32>
    %326 = arith.addf %325, %324 : vector<8x32xf32>
    %327 = arith.divf %325, %326 : vector<8x32xf32>
    %328 = vector.extract_strided_slice %321 {offsets = [0, 32], sizes = [8, 32], strides = [1, 1]} : vector<8x128xf32> to vector<8x32xf32>
    %329 = arith.negf %328 : vector<8x32xf32>
    %330 = math.exp %329 : vector<8x32xf32>
    %cst_93 = arith.constant 1.000000e+00 : f32
    %331 = vector.broadcast %cst_93 : f32 to vector<8x32xf32>
    %332 = arith.addf %331, %330 : vector<8x32xf32>
    %333 = arith.divf %331, %332 : vector<8x32xf32>
    %334 = vector.extract_strided_slice %321 {offsets = [0, 64], sizes = [8, 32], strides = [1, 1]} : vector<8x128xf32> to vector<8x32xf32>
    %335 = math.tanh %334 : vector<8x32xf32>
    %336 = vector.extract_strided_slice %321 {offsets = [0, 96], sizes = [8, 32], strides = [1, 1]} : vector<8x128xf32> to vector<8x32xf32>
    %337 = arith.negf %336 : vector<8x32xf32>
    %338 = math.exp %337 : vector<8x32xf32>
    %cst_94 = arith.constant 1.000000e+00 : f32
    %339 = vector.broadcast %cst_94 : f32 to vector<8x32xf32>
    %340 = arith.addf %339, %338 : vector<8x32xf32>
    %341 = arith.divf %339, %340 : vector<8x32xf32>
    %342 = arith.mulf %333, %313 : vector<8x32xf32>
    %343 = arith.mulf %327, %335 : vector<8x32xf32>
    %344 = arith.addf %342, %343 : vector<8x32xf32>
    %345 = math.tanh %344 : vector<8x32xf32>
    %346 = arith.mulf %341, %345 : vector<8x32xf32>
    %c2_i32_95 = arith.constant 2 : i32
    %c8_i32_96 = arith.constant 8 : i32
    %347 = arith.muli %c2_i32_95, %c8_i32_96 : i32
    %348 = tpu.assume_multiple %347, 8 : i32
    %349 = arith.index_cast %348 : i32 to index
    %c0_97 = arith.constant 0 : index
    %350 = vector.load %arg11[%349, %c0_97] : memref<64x128xf32, #tpu.memory_space<vmem>>, vector<8x128xf32>
    %cst_98 = arith.constant dense<0.000000e+00> : vector<8x128xf32>
    %351 = tpu.matmul %346, %282, %cst_98 {dimension_numbers = #tpu.dot_dimension_numbers<[1], [0], [0], [1], [0, 0, 1, 1], [], []>} : vector<8x32xf32>, vector<32x128xf32>, vector<8x128xf32> -> vector<8x128xf32>
    %352 = arith.addf %350, %351 : vector<8x128xf32>
    %353 = vector.extract_strided_slice %352 {offsets = [0, 0], sizes = [8, 32], strides = [1, 1]} : vector<8x128xf32> to vector<8x32xf32>
    %354 = arith.negf %353 : vector<8x32xf32>
    %355 = math.exp %354 : vector<8x32xf32>
    %cst_99 = arith.constant 1.000000e+00 : f32
    %356 = vector.broadcast %cst_99 : f32 to vector<8x32xf32>
    %357 = arith.addf %356, %355 : vector<8x32xf32>
    %358 = arith.divf %356, %357 : vector<8x32xf32>
    %359 = vector.extract_strided_slice %352 {offsets = [0, 32], sizes = [8, 32], strides = [1, 1]} : vector<8x128xf32> to vector<8x32xf32>
    %360 = arith.negf %359 : vector<8x32xf32>
    %361 = math.exp %360 : vector<8x32xf32>
    %cst_100 = arith.constant 1.000000e+00 : f32
    %362 = vector.broadcast %cst_100 : f32 to vector<8x32xf32>
    %363 = arith.addf %362, %361 : vector<8x32xf32>
    %364 = arith.divf %362, %363 : vector<8x32xf32>
    %365 = vector.extract_strided_slice %352 {offsets = [0, 64], sizes = [8, 32], strides = [1, 1]} : vector<8x128xf32> to vector<8x32xf32>
    %366 = math.tanh %365 : vector<8x32xf32>
    %367 = vector.extract_strided_slice %352 {offsets = [0, 96], sizes = [8, 32], strides = [1, 1]} : vector<8x128xf32> to vector<8x32xf32>
    %368 = arith.negf %367 : vector<8x32xf32>
    %369 = math.exp %368 : vector<8x32xf32>
    %cst_101 = arith.constant 1.000000e+00 : f32
    %370 = vector.broadcast %cst_101 : f32 to vector<8x32xf32>
    %371 = arith.addf %370, %369 : vector<8x32xf32>
    %372 = arith.divf %370, %371 : vector<8x32xf32>
    %373 = arith.mulf %364, %344 : vector<8x32xf32>
    %374 = arith.mulf %358, %366 : vector<8x32xf32>
    %375 = arith.addf %373, %374 : vector<8x32xf32>
    %376 = math.tanh %375 : vector<8x32xf32>
    %377 = arith.mulf %372, %376 : vector<8x32xf32>
    %c3_i32_102 = arith.constant 3 : i32
    %c8_i32_103 = arith.constant 8 : i32
    %378 = arith.muli %c3_i32_102, %c8_i32_103 : i32
    %379 = tpu.assume_multiple %378, 8 : i32
    %380 = arith.index_cast %379 : i32 to index
    %c0_104 = arith.constant 0 : index
    %381 = vector.load %arg11[%380, %c0_104] : memref<64x128xf32, #tpu.memory_space<vmem>>, vector<8x128xf32>
    %cst_105 = arith.constant dense<0.000000e+00> : vector<8x128xf32>
    %382 = tpu.matmul %377, %282, %cst_105 {dimension_numbers = #tpu.dot_dimension_numbers<[1], [0], [0], [1], [0, 0, 1, 1], [], []>} : vector<8x32xf32>, vector<32x128xf32>, vector<8x128xf32> -> vector<8x128xf32>
    %383 = arith.addf %381, %382 : vector<8x128xf32>
    %384 = vector.extract_strided_slice %383 {offsets = [0, 0], sizes = [8, 32], strides = [1, 1]} : vector<8x128xf32> to vector<8x32xf32>
    %385 = arith.negf %384 : vector<8x32xf32>
    %386 = math.exp %385 : vector<8x32xf32>
    %cst_106 = arith.constant 1.000000e+00 : f32
    %387 = vector.broadcast %cst_106 : f32 to vector<8x32xf32>
    %388 = arith.addf %387, %386 : vector<8x32xf32>
    %389 = arith.divf %387, %388 : vector<8x32xf32>
    %390 = vector.extract_strided_slice %383 {offsets = [0, 32], sizes = [8, 32], strides = [1, 1]} : vector<8x128xf32> to vector<8x32xf32>
    %391 = arith.negf %390 : vector<8x32xf32>
    %392 = math.exp %391 : vector<8x32xf32>
    %cst_107 = arith.constant 1.000000e+00 : f32
    %393 = vector.broadcast %cst_107 : f32 to vector<8x32xf32>
    %394 = arith.addf %393, %392 : vector<8x32xf32>
    %395 = arith.divf %393, %394 : vector<8x32xf32>
    %396 = vector.extract_strided_slice %383 {offsets = [0, 64], sizes = [8, 32], strides = [1, 1]} : vector<8x128xf32> to vector<8x32xf32>
    %397 = math.tanh %396 : vector<8x32xf32>
    %398 = vector.extract_strided_slice %383 {offsets = [0, 96], sizes = [8, 32], strides = [1, 1]} : vector<8x128xf32> to vector<8x32xf32>
    %399 = arith.negf %398 : vector<8x32xf32>
    %400 = math.exp %399 : vector<8x32xf32>
    %cst_108 = arith.constant 1.000000e+00 : f32
    %401 = vector.broadcast %cst_108 : f32 to vector<8x32xf32>
    %402 = arith.addf %401, %400 : vector<8x32xf32>
    %403 = arith.divf %401, %402 : vector<8x32xf32>
    %404 = arith.mulf %395, %375 : vector<8x32xf32>
    %405 = arith.mulf %389, %397 : vector<8x32xf32>
    %406 = arith.addf %404, %405 : vector<8x32xf32>
    %407 = math.tanh %406 : vector<8x32xf32>
    %408 = arith.mulf %403, %407 : vector<8x32xf32>
    %c4_i32_109 = arith.constant 4 : i32
    %c8_i32_110 = arith.constant 8 : i32
    %409 = arith.muli %c4_i32_109, %c8_i32_110 : i32
    %410 = tpu.assume_multiple %409, 8 : i32
    %411 = arith.index_cast %410 : i32 to index
    %c0_111 = arith.constant 0 : index
    %412 = vector.load %arg11[%411, %c0_111] : memref<64x128xf32, #tpu.memory_space<vmem>>, vector<8x128xf32>
    %cst_112 = arith.constant dense<0.000000e+00> : vector<8x128xf32>
    %413 = tpu.matmul %408, %282, %cst_112 {dimension_numbers = #tpu.dot_dimension_numbers<[1], [0], [0], [1], [0, 0, 1, 1], [], []>} : vector<8x32xf32>, vector<32x128xf32>, vector<8x128xf32> -> vector<8x128xf32>
    %414 = arith.addf %412, %413 : vector<8x128xf32>
    %415 = vector.extract_strided_slice %414 {offsets = [0, 0], sizes = [8, 32], strides = [1, 1]} : vector<8x128xf32> to vector<8x32xf32>
    %416 = arith.negf %415 : vector<8x32xf32>
    %417 = math.exp %416 : vector<8x32xf32>
    %cst_113 = arith.constant 1.000000e+00 : f32
    %418 = vector.broadcast %cst_113 : f32 to vector<8x32xf32>
    %419 = arith.addf %418, %417 : vector<8x32xf32>
    %420 = arith.divf %418, %419 : vector<8x32xf32>
    %421 = vector.extract_strided_slice %414 {offsets = [0, 32], sizes = [8, 32], strides = [1, 1]} : vector<8x128xf32> to vector<8x32xf32>
    %422 = arith.negf %421 : vector<8x32xf32>
    %423 = math.exp %422 : vector<8x32xf32>
    %cst_114 = arith.constant 1.000000e+00 : f32
    %424 = vector.broadcast %cst_114 : f32 to vector<8x32xf32>
    %425 = arith.addf %424, %423 : vector<8x32xf32>
    %426 = arith.divf %424, %425 : vector<8x32xf32>
    %427 = vector.extract_strided_slice %414 {offsets = [0, 64], sizes = [8, 32], strides = [1, 1]} : vector<8x128xf32> to vector<8x32xf32>
    %428 = math.tanh %427 : vector<8x32xf32>
    %429 = vector.extract_strided_slice %414 {offsets = [0, 96], sizes = [8, 32], strides = [1, 1]} : vector<8x128xf32> to vector<8x32xf32>
    %430 = arith.negf %429 : vector<8x32xf32>
    %431 = math.exp %430 : vector<8x32xf32>
    %cst_115 = arith.constant 1.000000e+00 : f32
    %432 = vector.broadcast %cst_115 : f32 to vector<8x32xf32>
    %433 = arith.addf %432, %431 : vector<8x32xf32>
    %434 = arith.divf %432, %433 : vector<8x32xf32>
    %435 = arith.mulf %426, %406 : vector<8x32xf32>
    %436 = arith.mulf %420, %428 : vector<8x32xf32>
    %437 = arith.addf %435, %436 : vector<8x32xf32>
    %438 = math.tanh %437 : vector<8x32xf32>
    %439 = arith.mulf %434, %438 : vector<8x32xf32>
    %c5_i32_116 = arith.constant 5 : i32
    %c8_i32_117 = arith.constant 8 : i32
    %440 = arith.muli %c5_i32_116, %c8_i32_117 : i32
    %441 = tpu.assume_multiple %440, 8 : i32
    %442 = arith.index_cast %441 : i32 to index
    %c0_118 = arith.constant 0 : index
    %443 = vector.load %arg11[%442, %c0_118] : memref<64x128xf32, #tpu.memory_space<vmem>>, vector<8x128xf32>
    %cst_119 = arith.constant dense<0.000000e+00> : vector<8x128xf32>
    %444 = tpu.matmul %439, %282, %cst_119 {dimension_numbers = #tpu.dot_dimension_numbers<[1], [0], [0], [1], [0, 0, 1, 1], [], []>} : vector<8x32xf32>, vector<32x128xf32>, vector<8x128xf32> -> vector<8x128xf32>
    %445 = arith.addf %443, %444 : vector<8x128xf32>
    %446 = vector.extract_strided_slice %445 {offsets = [0, 0], sizes = [8, 32], strides = [1, 1]} : vector<8x128xf32> to vector<8x32xf32>
    %447 = arith.negf %446 : vector<8x32xf32>
    %448 = math.exp %447 : vector<8x32xf32>
    %cst_120 = arith.constant 1.000000e+00 : f32
    %449 = vector.broadcast %cst_120 : f32 to vector<8x32xf32>
    %450 = arith.addf %449, %448 : vector<8x32xf32>
    %451 = arith.divf %449, %450 : vector<8x32xf32>
    %452 = vector.extract_strided_slice %445 {offsets = [0, 32], sizes = [8, 32], strides = [1, 1]} : vector<8x128xf32> to vector<8x32xf32>
    %453 = arith.negf %452 : vector<8x32xf32>
    %454 = math.exp %453 : vector<8x32xf32>
    %cst_121 = arith.constant 1.000000e+00 : f32
    %455 = vector.broadcast %cst_121 : f32 to vector<8x32xf32>
    %456 = arith.addf %455, %454 : vector<8x32xf32>
    %457 = arith.divf %455, %456 : vector<8x32xf32>
    %458 = vector.extract_strided_slice %445 {offsets = [0, 64], sizes = [8, 32], strides = [1, 1]} : vector<8x128xf32> to vector<8x32xf32>
    %459 = math.tanh %458 : vector<8x32xf32>
    %460 = vector.extract_strided_slice %445 {offsets = [0, 96], sizes = [8, 32], strides = [1, 1]} : vector<8x128xf32> to vector<8x32xf32>
    %461 = arith.negf %460 : vector<8x32xf32>
    %462 = math.exp %461 : vector<8x32xf32>
    %cst_122 = arith.constant 1.000000e+00 : f32
    %463 = vector.broadcast %cst_122 : f32 to vector<8x32xf32>
    %464 = arith.addf %463, %462 : vector<8x32xf32>
    %465 = arith.divf %463, %464 : vector<8x32xf32>
    %466 = arith.mulf %457, %437 : vector<8x32xf32>
    %467 = arith.mulf %451, %459 : vector<8x32xf32>
    %468 = arith.addf %466, %467 : vector<8x32xf32>
    %469 = math.tanh %468 : vector<8x32xf32>
    %470 = arith.mulf %465, %469 : vector<8x32xf32>
    %c6_i32_123 = arith.constant 6 : i32
    %c8_i32_124 = arith.constant 8 : i32
    %471 = arith.muli %c6_i32_123, %c8_i32_124 : i32
    %472 = tpu.assume_multiple %471, 8 : i32
    %473 = arith.index_cast %472 : i32 to index
    %c0_125 = arith.constant 0 : index
    %474 = vector.load %arg11[%473, %c0_125] : memref<64x128xf32, #tpu.memory_space<vmem>>, vector<8x128xf32>
    %cst_126 = arith.constant dense<0.000000e+00> : vector<8x128xf32>
    %475 = tpu.matmul %470, %282, %cst_126 {dimension_numbers = #tpu.dot_dimension_numbers<[1], [0], [0], [1], [0, 0, 1, 1], [], []>} : vector<8x32xf32>, vector<32x128xf32>, vector<8x128xf32> -> vector<8x128xf32>
    %476 = arith.addf %474, %475 : vector<8x128xf32>
    %477 = vector.extract_strided_slice %476 {offsets = [0, 0], sizes = [8, 32], strides = [1, 1]} : vector<8x128xf32> to vector<8x32xf32>
    %478 = arith.negf %477 : vector<8x32xf32>
    %479 = math.exp %478 : vector<8x32xf32>
    %cst_127 = arith.constant 1.000000e+00 : f32
    %480 = vector.broadcast %cst_127 : f32 to vector<8x32xf32>
    %481 = arith.addf %480, %479 : vector<8x32xf32>
    %482 = arith.divf %480, %481 : vector<8x32xf32>
    %483 = vector.extract_strided_slice %476 {offsets = [0, 32], sizes = [8, 32], strides = [1, 1]} : vector<8x128xf32> to vector<8x32xf32>
    %484 = arith.negf %483 : vector<8x32xf32>
    %485 = math.exp %484 : vector<8x32xf32>
    %cst_128 = arith.constant 1.000000e+00 : f32
    %486 = vector.broadcast %cst_128 : f32 to vector<8x32xf32>
    %487 = arith.addf %486, %485 : vector<8x32xf32>
    %488 = arith.divf %486, %487 : vector<8x32xf32>
    %489 = vector.extract_strided_slice %476 {offsets = [0, 64], sizes = [8, 32], strides = [1, 1]} : vector<8x128xf32> to vector<8x32xf32>
    %490 = math.tanh %489 : vector<8x32xf32>
    %491 = vector.extract_strided_slice %476 {offsets = [0, 96], sizes = [8, 32], strides = [1, 1]} : vector<8x128xf32> to vector<8x32xf32>
    %492 = arith.negf %491 : vector<8x32xf32>
    %493 = math.exp %492 : vector<8x32xf32>
    %cst_129 = arith.constant 1.000000e+00 : f32
    %494 = vector.broadcast %cst_129 : f32 to vector<8x32xf32>
    %495 = arith.addf %494, %493 : vector<8x32xf32>
    %496 = arith.divf %494, %495 : vector<8x32xf32>
    %497 = arith.mulf %488, %468 : vector<8x32xf32>
    %498 = arith.mulf %482, %490 : vector<8x32xf32>
    %499 = arith.addf %497, %498 : vector<8x32xf32>
    %500 = math.tanh %499 : vector<8x32xf32>
    %501 = arith.mulf %496, %500 : vector<8x32xf32>
    %c7_i32_130 = arith.constant 7 : i32
    %c8_i32_131 = arith.constant 8 : i32
    %502 = arith.muli %c7_i32_130, %c8_i32_131 : i32
    %503 = tpu.assume_multiple %502, 8 : i32
    %504 = arith.index_cast %503 : i32 to index
    %c0_132 = arith.constant 0 : index
    %505 = vector.load %arg11[%504, %c0_132] : memref<64x128xf32, #tpu.memory_space<vmem>>, vector<8x128xf32>
    %cst_133 = arith.constant dense<0.000000e+00> : vector<8x128xf32>
    %506 = tpu.matmul %501, %282, %cst_133 {dimension_numbers = #tpu.dot_dimension_numbers<[1], [0], [0], [1], [0, 0, 1, 1], [], []>} : vector<8x32xf32>, vector<32x128xf32>, vector<8x128xf32> -> vector<8x128xf32>
    %507 = arith.addf %505, %506 : vector<8x128xf32>
    %508 = vector.extract_strided_slice %507 {offsets = [0, 0], sizes = [8, 32], strides = [1, 1]} : vector<8x128xf32> to vector<8x32xf32>
    %509 = arith.negf %508 : vector<8x32xf32>
    %510 = math.exp %509 : vector<8x32xf32>
    %cst_134 = arith.constant 1.000000e+00 : f32
    %511 = vector.broadcast %cst_134 : f32 to vector<8x32xf32>
    %512 = arith.addf %511, %510 : vector<8x32xf32>
    %513 = arith.divf %511, %512 : vector<8x32xf32>
    %514 = vector.extract_strided_slice %507 {offsets = [0, 32], sizes = [8, 32], strides = [1, 1]} : vector<8x128xf32> to vector<8x32xf32>
    %515 = arith.negf %514 : vector<8x32xf32>
    %516 = math.exp %515 : vector<8x32xf32>
    %cst_135 = arith.constant 1.000000e+00 : f32
    %517 = vector.broadcast %cst_135 : f32 to vector<8x32xf32>
    %518 = arith.addf %517, %516 : vector<8x32xf32>
    %519 = arith.divf %517, %518 : vector<8x32xf32>
    %520 = vector.extract_strided_slice %507 {offsets = [0, 64], sizes = [8, 32], strides = [1, 1]} : vector<8x128xf32> to vector<8x32xf32>
    %521 = math.tanh %520 : vector<8x32xf32>
    %522 = vector.extract_strided_slice %507 {offsets = [0, 96], sizes = [8, 32], strides = [1, 1]} : vector<8x128xf32> to vector<8x32xf32>
    %523 = arith.negf %522 : vector<8x32xf32>
    %524 = math.exp %523 : vector<8x32xf32>
    %cst_136 = arith.constant 1.000000e+00 : f32
    %525 = vector.broadcast %cst_136 : f32 to vector<8x32xf32>
    %526 = arith.addf %525, %524 : vector<8x32xf32>
    %527 = arith.divf %525, %526 : vector<8x32xf32>
    %528 = arith.mulf %519, %499 : vector<8x32xf32>
    %529 = arith.mulf %513, %521 : vector<8x32xf32>
    %530 = arith.addf %528, %529 : vector<8x32xf32>
    %531 = math.tanh %530 : vector<8x32xf32>
    %532 = arith.mulf %527, %531 : vector<8x32xf32>
    %c8_i32_137 = arith.constant 8 : i32
    %c0_138 = arith.constant 0 : index
    %c0_139 = arith.constant 0 : index
    %533 = vector.load %arg8[%c0_138, %c0_139] : memref<32x1xf32, #tpu.memory_space<vmem>>, vector<32x1xf32>
    %cst_140 = arith.constant dense<0.000000e+00> : vector<8x1xf32>
    %534 = tpu.matmul %532, %533, %cst_140 {dimension_numbers = #tpu.dot_dimension_numbers<[1], [0], [0], [1], [0, 0, 1, 1], [], []>} : vector<8x32xf32>, vector<32x1xf32>, vector<8x1xf32> -> vector<8x1xf32>
    %c0_141 = arith.constant 0 : index
    %c0_142 = arith.constant 0 : index
    %535 = vector.load %arg9[%c0_141, %c0_142] : memref<1x1xf32, #tpu.memory_space<vmem>>, vector<1x1xf32>
    %536 = vector.broadcast %535 : vector<1x1xf32> to vector<8x1xf32>
    %537 = arith.addf %534, %536 : vector<8x1xf32>
    %c0_143 = arith.constant 0 : index
    %c0_144 = arith.constant 0 : index
    %538 = vector.load %arg10[%c0_143, %c0_144] : memref<8x1xf32, #tpu.memory_space<vmem>>, vector<8x1xf32>
    tpu.vector_store %arg10[%c0_143, %c0_144], %537 {strides = array<i32>} : memref<8x1xf32, #tpu.memory_space<vmem>>, vector<8x1xf32>,
    return
  }
  func.func @transform_0(%arg0: i32) -> (i32, i32, i32) {
    %c0_i32 = arith.constant 0 : i32
    %c0_i32_0 = arith.constant 0 : i32
    %c0_i32_1 = arith.constant 0 : i32
    return %c0_i32, %arg0, %c0_i32_0 : i32, i32, i32
  }
  func.func @transform_1(%arg0: i32) -> (i32, i32) {
    %c0_i32 = arith.constant 0 : i32
    %c0_i32_0 = arith.constant 0 : i32
    %c0_i32_1 = arith.constant 0 : i32
    return %c0_i32, %c0_i32_0 : i32, i32
  }
  func.func @transform_2(%arg0: i32) -> (i32, i32) {
    %c0_i32 = arith.constant 0 : i32
    %c0_i32_0 = arith.constant 0 : i32
    %c0_i32_1 = arith.constant 0 : i32
    return %c0_i32, %c0_i32_0 : i32, i32
  }
  func.func @transform_3(%arg0: i32) -> (i32, i32) {
    %c0_i32 = arith.constant 0 : i32
    %c0_i32_0 = arith.constant 0 : i32
    %c0_i32_1 = arith.constant 0 : i32
    return %c0_i32, %c0_i32_0 : i32, i32
  }
  func.func @transform_4(%arg0: i32) -> (i32, i32) {
    %c0_i32 = arith.constant 0 : i32
    %c0_i32_0 = arith.constant 0 : i32
    %c0_i32_1 = arith.constant 0 : i32
    return %c0_i32, %c0_i32_0 : i32, i32
  }
  func.func @transform_5(%arg0: i32) -> (i32, i32) {
    %c0_i32 = arith.constant 0 : i32
    %c0_i32_0 = arith.constant 0 : i32
    %c0_i32_1 = arith.constant 0 : i32
    return %c0_i32, %c0_i32_0 : i32, i32
  }
  func.func @transform_6(%arg0: i32) -> (i32, i32) {
    %c0_i32 = arith.constant 0 : i32
    %c0_i32_0 = arith.constant 0 : i32
    %c0_i32_1 = arith.constant 0 : i32
    return %c0_i32, %c0_i32_0 : i32, i32
  }
  func.func @transform_7(%arg0: i32) -> (i32, i32) {
    %c0_i32 = arith.constant 0 : i32
    %c0_i32_0 = arith.constant 0 : i32
    %c0_i32_1 = arith.constant 0 : i32
    return %c0_i32, %c0_i32_0 : i32, i32
  }
  func.func @transform_8(%arg0: i32) -> (i32, i32) {
    %c0_i32 = arith.constant 0 : i32
    %c0_i32_0 = arith.constant 0 : i32
    %c0_i32_1 = arith.constant 0 : i32
    return %c0_i32, %c0_i32_0 : i32, i32
  }
  func.func @transform_9(%arg0: i32) -> (i32, i32) {
    %c0_i32 = arith.constant 0 : i32
    %c0_i32_0 = arith.constant 0 : i32
    return %arg0, %c0_i32 : i32, i32
  }
}

</mosaic_0001>

<bundles_post_ra>
// kernel: lstm_model_forward.1
= control target key start
LH: loop header
LB: loop body
LE: loop exit
PB: predicated region body
PF: predicated region fallthrough
CT: control target
= control target key end

     0   :  { %vm75_vm0 = vcmask 1043456   ;;  %vm50_vm1 = vcmask 31744   ;;  %v2601_v0 = vmov 0.0   ;;  %vm2602_vm2 = vmmov 0   ;;  %s2603_s23 = smov 64   ;;  %s3080_s1 = inlined_call_operand.vmem [shape: f32[4,128], index: 1, kind: input, shape index: {}]   ;;  %s3081_s2 = inlined_call_operand.vmem [shape: f32[32,128], index: 2, kind: input, shape index: {}]   ;;  %s3082_s0 = inlined_call_operand.vmem [shape: f32[8,8,4], index: 0, kind: input, shape index: {}]   ;;  %s3083_s3 = inlined_call_operand.vmem [shape: f32[1,128], index: 3, kind: input, shape index: {}]   ;;  %s3084_s4 = inlined_call_operand.vmem [shape: f32[32,128], index: 4, kind: input, shape index: {}]   ;;  %s3085_s5 = inlined_call_operand.vmem [shape: f32[32,128], index: 5, kind: input, shape index: {}]   ;;  %s3086_s6 = inlined_call_operand.vmem [shape: f32[1,128], index: 6, kind: input, shape index: {}]   ;;  %s3087_s7 = inlined_call_operand.vmem [shape: f32[32,1], index: 7, kind: input, shape index: {}]   ;;  %s3088_s8 = inlined_call_operand.<no memory space> [shape: f32[1,1], index: 8, kind: input, shape index: {}]   ;;  %s3089_s9 = inlined_call_operand.vmem [shape: f32[8,1], index: 9, kind: output, shape index: {}]  }
   0x1   :  { %2262 = vmatprep.subr.mxu1 %v2601_v0  ;;  %v42_v1 = vld [vmem:[%s3080_s1] sm:$0xf]  ;;  %v2662_v2 = vld [vmem:[%s3081_s2 + $0x18] sm:$0xff]  ;;  %2270 = vmatprep.mubr.msk.f32.mxu1 %vm2602_vm2, %v2601_v0  ;;  %v35_v4 = vld [vmem:[%s3082_s0 + $0x8] sm:$0xff]  ;;  %vm197_vm3 = vcmask 261120   ;;  %vm2085_vm4 = vcmask 7168  }
   0x2   :  { %v34_v3 = vld [vmem:[%s3082_s0] sm:$0xff]  ;;  %2248 = vmatprep.subr.msk.mxu0 %vm75_vm0, %v42_v1  ;;  %2263 = vmatpush3.msra.mxu1 %v2662_v2  ;;  %v2676_v5 = vld [vmem:[%s3081_s2 + $0x10] sm:$0xff]  ;;  %v2684_v6 = vld [vmem:[%s3081_s2 + $0x8] sm:$0xff] }
   0x3   :  { %2249 = vmatpush3.msk.msra.mxu0 %vm75_vm0, %v42_v1  ;;  %2250 = vmatprep.mubr.msk.f32.mxu0 %vm50_vm1, %v34_v3  ;;  %v2692_v7 = vld [vmem:[%s3081_s2] sm:$0xff]  ;;  %v36_v43 = vld [vmem:[%s3082_s0 + $0x10] sm:$0xff]  ;;  %v37_v44 = vld [vmem:[%s3082_s0 + $0x18] sm:$0xff] }
   0x4   :  { %2264 = vmatprep.subr.mxu1 %v2601_v0  ;;  %2251 = vmatmul.mubr.msk.f32.vlgmr.msra.gmra.mxu0 %vm50_vm1, %v35_v4  ;;  %v2720_v9 = vld [vmem:[%s3083_s3] ss:$0 sm:$0xff]  ;;  %s2604_s3 = smov 32   ;;  %v39_v46 = vld [vmem:[%s3082_s0 + $0x28] sm:$0xff]  ;;  %v40_v47 = vld [vmem:[%s3082_s0 + $0x30] sm:$0xff] }
   0x5   :  { %2265 = vmatpush3.msra.mxu1 %v2676_v5  ;;  %2284 = vmatprep.subr.mxu0 %v2601_v0  ;;  %v38_v45 = vld [vmem:[%s3082_s0 + $0x20] sm:$0xff]  ;;  %v41_v48 = vld [vmem:[%s3082_s0 + $0x38] sm:$0xff] }
   0x6   :  { %2266 = vmatprep.subr.mxu1 %v2601_v0  ;;  %2285 = vmatpush3.msra.mxu0 %v2662_v2 }
   0x7   :  { %2267 = vmatpush3.msra.mxu1 %v2684_v6  ;;  %2286 = vmatprep.subr.mxu0 %v2601_v0 }
   0x8   :  { %2268 = vmatprep.subr.mxu1 %v2601_v0  ;;  %2287 = vmatpush3.msra.mxu0 %v2676_v5 }
   0x9   :  { %2269 = vmatpush3.msra.mxu1 %v2692_v7  ;;  %2288 = vmatprep.subr.mxu0 %v2601_v0 }
   0xa   :  { %2271 = vmatmul.mubr.f32.vlgmr.msra.gmra.mxu1 %v2601_v0  ;;  %2273 = vmatprep.subr.mxu1 %v2601_v0 }
   0xb   :  { %2274 = vmatpush3.msra.mxu1 %v2662_v2  ;;  %2281 = vmatprep.mubr.msk.f32.mxu1 %vm2602_vm2, %v2601_v0 }
   0xc   :  { %2275 = vmatprep.subr.mxu1 %v2601_v0  ;;  %2289 = vmatpush3.msra.mxu0 %v2684_v6 }
   0xd   :  { %2276 = vmatpush3.msra.mxu1 %v2676_v5  ;;  %2290 = vmatprep.subr.mxu0 %v2601_v0 }
   0xe   :  { %2277 = vmatprep.subr.mxu1 %v2601_v0  ;;  %2291 = vmatpush3.msra.mxu0 %v2692_v7 }
   0xf   :  { %2278 = vmatpush3.msra.mxu1 %v2684_v6  ;;  %2306 = vmatprep.subr.mxu0 %v2601_v0 }
  0x10   :  { %2279 = vmatprep.subr.mxu1 %v2601_v0  ;;  %2253 = vmatprep.mubr.msk.f32.mxu0 %vm50_vm1, %v36_v43 }
  0x11   :  { %2280 = vmatpush3.msra.mxu1 %v2692_v7  ;;  %2254 = vmatmul.mubr.msk.f32.gmra.mxu0 %vm50_vm1, %v37_v44 }
  0x12   :  { %2295 = vmatprep.subr.mxu1 %v2601_v0  ;;  %2256 = vmatprep.mubr.msk.f32.mxu0 %vm50_vm1, %v38_v45 }
  0x15   :  { %2257 = vmatmul.mubr.msk.f32.gmra.mxu0 %vm50_vm1, %v39_v46 }
  0x16   :  { %2259 = vmatprep.mubr.msk.f32.mxu0 %vm50_vm1, %v40_v47 }
  0x19   :  { %2260 = vmatmul.mubr.msk.f32.gmra.mxu0 %vm50_vm1, %v41_v48 }
  0x1a   :  { %2292 = vmatprep.mubr.msk.f32.mxu0 %vm2602_vm2, %v2601_v0 }
  0xc4   :  { %v2252_v8 = vpop.f32.mrf.mxu0 }
  0xc5   :  { %v151_v29 = vadd.f32 %v2252_v8, %v2720_v9 }
  0xc6   :  { %v145_v10 = vpop.f32.mrf.mxu0 }
  0xc7   :  { %v146_v11 = vadd.f32 %v2720_v9, %v145_v10 }
  0xca   :  { %v267_v12 = vpop.f32.mrf.mxu1 }
  0xcb   :  { %v271_v13 = vadd.f32 %v267_v12, %v146_v11 }
  0xcc   :  { %v2272_v14 = vpop.f32.mrf.mxu1 }
  0xcd   :  { %2473 = vtanh.f32 %v271_v13  ;;  %v2101_v16 = vmul.f32 -1.442695, %v271_v13 }
  0xcf   :  { %2475 = vpow2.f32 %v2101_v16 }
  0xd1   :  { %v2255_v53 = vpop.f32.mrf.mxu0 }
  0xd3   :  { %v155_v54 = vpop.f32.mrf.mxu0 }
  0xd4   :  { %v156_v59 = vadd.f32 %v2720_v9, %v155_v54 }
  0xd5   :  { %v2782_v55 = vpop.f32.mrf.mxu0 }
  0xd7   :  { %v2784_v56 = vpop.f32.mrf.mxu0 }
  0xd9   :  { %v2786_v57 = vpop.f32.mrf.mxu0 }
  0xda   :  { %v2474_v15 = vpop.eup %2473 }
  0xdb   :  { %281 = vrot.lane.b32.xlu0 %v2474_v15, %s2603_s23  ;;  %v2788_v58 = vpop.f32.mrf.mxu0 }
  0xdc   :  { %v2476_v17 = vpop.eup %2475 }
  0xdd   :  { %v275_v18 = vadd.f32 1.0, %v2476_v17 }
  0xdf   :  { %2477 = vrcp.f32 %v275_v18 }
  0xec   :  { %v2478_v19 = vpop.eup %2477 }
  0xed   :  { %v279_v22 = vmul.f32 0.0, %v2478_v19 }
 0x14d   :  { %v282_v20 = vpop.permute.xlu0 %281 }
 0x14e   :  { %v284_v21 = vmul.f32 %v2478_v19, %v282_v20 }
 0x150   :  { %286 = vrot.lane.b32.xlu0 %v284_v21, %s2604_s3 }
 0x1c2   :  { %v287_v23 = vpop.permute.xlu0 %286 }
 0x1c3   :  { %v289_v24 = vadd.f32 %v287_v23, %v279_v22 }
 0x1c5   :  { %2479 = vtanh.f32 %v289_v24 }
 0x1d2   :  { %v2480_v25 = vpop.eup %2479 }
 0x1d3   :  { %292 = vrot.lane.b32.xlu1 %v2480_v25, %s2603_s23 }
 0x245   :  { %v293_v26 = vpop.permute.xlu1 %292 }
 0x246   :  { %v295_v27 = vmul.f32 %v2478_v19, %v293_v26  ;;  %v161_v19 = vadd.f32 %v2255_v53, %v2720_v9 }
 0x248   :  { %297 = vrot.lane.b32.xlu1 %v295_v27, %s2604_s3 }
 0x2ba   :  { %v298_v28 = vpop.permute.xlu1 %297 }
 0x2bb   :  { %300 = vst.msk [vmem:[#allocation3] sm:$0xff] %vm197_vm3, %v298_v28  ;;  %2282 = vmatmul.mubr.msk.f32.vlgmr.msra.gmra.mxu1 %vm197_vm3, %v298_v28 }
 0x2bc   :  { %2296 = vmatpush3.msra.mxu1 %v2662_v2  ;;  %2303 = vmatprep.mubr.msk.f32.mxu1 %vm2602_vm2, %v2601_v0 }
 0x2bd   :  { %2297 = vmatprep.subr.mxu1 %v2601_v0 }
 0x2be   :  { %2298 = vmatpush3.msra.mxu1 %v2676_v5 }
 0x2bf   :  { %2299 = vmatprep.subr.mxu1 %v2601_v0 }
 0x2c0   :  { %2300 = vmatpush3.msra.mxu1 %v2684_v6 }
 0x2c1   :  { %2301 = vmatprep.subr.mxu1 %v2601_v0 }
 0x2c2   :  { %2302 = vmatpush3.msra.mxu1 %v2692_v7 }
 0x2c3   :  { %2317 = vmatprep.subr.mxu1 %v2601_v0 }
 0x37b   :  { %v371_v30 = vpop.f32.mrf.mxu1 }
 0x37c   :  { %v375_v31 = vadd.f32 %v371_v30, %v151_v29 }
 0x37d   :  { %v2283_v32 = vpop.f32.mrf.mxu1 }
 0x37e   :  { %2481 = vtanh.f32 %v375_v31  ;;  %v2103_v34 = vmul.f32 -1.442695, %v375_v31 }
 0x380   :  { %2483 = vpow2.f32 %v2103_v34 }
 0x38b   :  { %v2482_v33 = vpop.eup %2481 }
 0x38c   :  { %385 = vrot.lane.b32.xlu0 %v2482_v33, %s2603_s23 }
 0x38d   :  { %v2484_v35 = vpop.eup %2483 }
 0x38e   :  { %v379_v36 = vadd.f32 1.0, %v2484_v35 }
 0x390   :  { %2485 = vrcp.f32 %v379_v36 }
 0x39d   :  { %v2486_v37 = vpop.eup %2485 }
 0x39e   :  { %v383_v40 = vmul.f32 %v2486_v37, %v289_v24 }
 0x3fe   :  { %v386_v38 = vpop.permute.xlu0 %385 }
 0x3ff   :  { %v388_v39 = vmul.f32 %v2486_v37, %v386_v38 }
 0x401   :  { %390 = vrot.lane.b32.xlu1 %v388_v39, %s2604_s3 }
 0x473   :  { %v391_v41 = vpop.permute.xlu1 %390 }
 0x474   :  { %v393_v42 = vadd.f32 %v391_v41, %v383_v40 }
 0x476   :  { %2487 = vtanh.f32 %v393_v42 }
 0x483   :  { %v2488_v49 = vpop.eup %2487 }
 0x484   :  { %396 = vrot.lane.b32.xlu0 %v2488_v49, %s2603_s23 }
 0x4f6   :  { %v397_v50 = vpop.permute.xlu0 %396 }
 0x4f7   :  { %v399_v51 = vmul.f32 %v2486_v37, %v397_v50  ;;  %v166_v37 = vadd.f32 %v2720_v9, %v2784_v56 }
 0x4f9   :  { %401 = vrot.lane.b32.xlu1 %v399_v51, %s2604_s3 }
 0x56b   :  { %v402_v52 = vpop.permute.xlu1 %401 }
 0x56c   :  { %405 = vst.msk [vmem:[#allocation3 + $0x8] sm:$0xff] %vm197_vm3, %v402_v52  ;;  %2293 = vmatmul.mubr.msk.f32.vlgmr.msra.gmra.mxu0 %vm197_vm3, %v402_v52 }
 0x56d   :  { %2307 = vmatpush3.msra.mxu0 %v2662_v2  ;;  %2314 = vmatprep.mubr.msk.f32.mxu0 %vm2602_vm2, %v2601_v0 }
 0x56e   :  { %2308 = vmatprep.subr.mxu0 %v2601_v0 }
 0x56f   :  { %2309 = vmatpush3.msra.mxu0 %v2676_v5 }
 0x570   :  { %2310 = vmatprep.subr.mxu0 %v2601_v0 }
 0x571   :  { %2311 = vmatpush3.msra.mxu0 %v2684_v6 }
 0x572   :  { %2312 = vmatprep.subr.mxu0 %v2601_v0 }
 0x573   :  { %2313 = vmatpush3.msra.mxu0 %v2692_v7 }
 0x574   :  { %2328 = vmatprep.subr.mxu0 %v2601_v0 }
 0x62c   :  { %v476_v60 = vpop.f32.mrf.mxu0 }
 0x62d   :  { %v480_v61 = vadd.f32 %v476_v60, %v156_v59 }
 0x62e   :  { %v2294_v62 = vpop.f32.mrf.mxu0 }
 0x62f   :  { %2489 = vtanh.f32 %v480_v61  ;;  %v2105_v1 = vmul.f32 -1.442695, %v480_v61 }
 0x631   :  { %2491 = vpow2.f32 %v2105_v1 }
 0x63c   :  { %v2490_v63 = vpop.eup %2489 }
 0x63d   :  { %490 = vrot.lane.b32.xlu0 %v2490_v63, %s2603_s23 }
 0x63e   :  { %v2492_v3 = vpop.eup %2491 }
 0x63f   :  { %v484_v4 = vadd.f32 1.0, %v2492_v3 }
 0x641   :  { %2493 = vrcp.f32 %v484_v4 }
 0x64e   :  { %v2494_v8 = vpop.eup %2493 }
 0x64f   :  { %v488_v12 = vmul.f32 %v2494_v8, %v393_v42 }
 0x6af   :  { %v491_v10 = vpop.permute.xlu0 %490 }
 0x6b0   :  { %v493_v11 = vmul.f32 %v2494_v8, %v491_v10 }
 0x6b2   :  { %495 = vrot.lane.b32.xlu1 %v493_v11, %s2604_s3 }
 0x724   :  { %v496_v13 = vpop.permute.xlu1 %495 }
 0x725   :  { %v498_v14 = vadd.f32 %v496_v13, %v488_v12 }
 0x727   :  { %2495 = vtanh.f32 %v498_v14 }
 0x734   :  { %v2496_v15 = vpop.eup %2495 }
 0x735   :  { %501 = vrot.lane.b32.xlu0 %v2496_v15, %s2603_s23  ;;  %v1036_v15 = vld [vmem:[#allocation3] sm:$0xff] }
 0x7a7   :  { %v502_v16 = vpop.permute.xlu0 %501 }
 0x7a8   :  { %v504_v17 = vmul.f32 %v2494_v8, %v502_v16  ;;  %v1047_v8 = vld [vmem:[%s3084_s4 + $0x18] sm:$0xff]  ;;  %v1045_v16 = vld [vmem:[%s3084_s4 + $0x8] sm:$0xff] }
 0x7aa   :  { %506 = vrot.lane.b32.xlu1 %v504_v17, %s2604_s3  ;;  %v1044_v17 = vld [vmem:[%s3084_s4] sm:$0xff] }
 0x81c   :  { %v507_v18 = vpop.permute.xlu1 %506 }
 0x81d   :  { %510 = vst.msk [vmem:[#allocation3 + $0x10] sm:$0xff] %vm197_vm3, %v507_v18  ;;  %2304 = vmatmul.mubr.msk.f32.vlgmr.msra.gmra.mxu1 %vm197_vm3, %v507_v18  ;;  %v1037_v18 = vld [vmem:[#allocation3 + $0x8] sm:$0xff] }
 0x81e   :  { %2318 = vmatpush3.msra.mxu1 %v2662_v2  ;;  %2325 = vmatprep.mubr.msk.f32.mxu1 %vm2602_vm2, %v2601_v0 }
 0x81f   :  { %2319 = vmatprep.subr.mxu1 %v2601_v0 }
 0x820   :  { %2320 = vmatpush3.msra.mxu1 %v2676_v5 }
 0x821   :  { %2321 = vmatprep.subr.mxu1 %v2601_v0 }
 0x822   :  { %2322 = vmatpush3.msra.mxu1 %v2684_v6 }
 0x823   :  { %2323 = vmatprep.subr.mxu1 %v2601_v0 }
 0x824   :  { %2324 = vmatpush3.msra.mxu1 %v2692_v7 }
 0x825   :  { %2339 = vmatprep.subr.mxu1 %v2601_v0 }
 0x8dd   :  { %v581_v20 = vpop.f32.mrf.mxu1 }
 0x8de   :  { %v585_v21 = vadd.f32 %v581_v20, %v161_v19  ;;  %v1038_v19 = vld [vmem:[#allocation3 + $0x10] sm:$0xff] }
 0x8df   :  { %v2305_v22 = vpop.f32.mrf.mxu1 }
 0x8e0   :  { %2497 = vtanh.f32 %v585_v21  ;;  %v2107_v24 = vmul.f32 -1.442695, %v585_v21 }
 0x8e2   :  { %2499 = vpow2.f32 %v2107_v24 }
 0x8ed   :  { %v2498_v23 = vpop.eup %2497 }
 0x8ee   :  { %595 = vrot.lane.b32.xlu0 %v2498_v23, %s2603_s23  ;;  %v176_v23 = vadd.f32 %v2720_v9, %v2788_v58 }
 0x8ef   :  { %v2500_v25 = vpop.eup %2499 }
 0x8f0   :  { %v589_v26 = vadd.f32 1.0, %v2500_v25 }
 0x8f2   :  { %2501 = vrcp.f32 %v589_v26 }
 0x8ff   :  { %v2502_v27 = vpop.eup %2501 }
 0x900   :  { %v593_v30 = vmul.f32 %v2502_v27, %v498_v14  ;;  %v1046_v14 = vld [vmem:[%s3084_s4 + $0x10] sm:$0xff] }
 0x960   :  { %v596_v28 = vpop.permute.xlu0 %595 }
 0x961   :  { %v598_v29 = vmul.f32 %v2502_v27, %v596_v28 }
 0x963   :  { %600 = vrot.lane.b32.xlu1 %v598_v29, %s2604_s3 }
 0x9d5   :  { %v601_v31 = vpop.permute.xlu1 %600 }
 0x9d6   :  { %v603_v32 = vadd.f32 %v601_v31, %v593_v30 }
 0x9d8   :  { %2503 = vtanh.f32 %v603_v32 }
 0x9e5   :  { %v2504_v33 = vpop.eup %2503 }
 0x9e6   :  { %606 = vrot.lane.b32.xlu0 %v2504_v33, %s2603_s23 }
 0xa58   :  { %v607_v34 = vpop.permute.xlu0 %606 }
 0xa59   :  { %v609_v35 = vmul.f32 %v2502_v27, %v607_v34 }
 0xa5b   :  { %611 = vrot.lane.b32.xlu1 %v609_v35, %s2604_s3 }
 0xacd   :  { %v612_v36 = vpop.permute.xlu1 %611 }
 0xace   :  { %615 = vst.msk [vmem:[#allocation3 + $0x18] sm:$0xff] %vm197_vm3, %v612_v36  ;;  %2315 = vmatmul.mubr.msk.f32.vlgmr.msra.gmra.mxu0 %vm197_vm3, %v612_v36 }
 0xacf   :  { %2329 = vmatpush3.msra.mxu0 %v2662_v2  ;;  %2336 = vmatprep.mubr.msk.f32.mxu0 %vm2602_vm2, %v2601_v0 }
 0xad0   :  { %2330 = vmatprep.subr.mxu0 %v2601_v0 }
 0xad1   :  { %2331 = vmatpush3.msra.mxu0 %v2676_v5 }
 0xad2   :  { %2332 = vmatprep.subr.mxu0 %v2601_v0 }
 0xad3   :  { %2333 = vmatpush3.msra.mxu0 %v2684_v6 }
 0xad4   :  { %2334 = vmatprep.subr.mxu0 %v2601_v0 }
 0xad5   :  { %2335 = vmatpush3.msra.mxu0 %v2692_v7  ;;  %v1039_v20 = vld [vmem:[#allocation3 + $0x18] sm:$0xff] }
 0xad6   :  { %2350 = vmatprep.subr.mxu0 %v1047_v8 }
 0xb8e   :  { %v686_v38 = vpop.f32.mrf.mxu0 }
 0xb8f   :  { %v690_v39 = vadd.f32 %v686_v38, %v166_v37  ;;  %v2879_v37 = vld [vmem:[%s3085_s5 + $0x18] sm:$0xff]  ;;  %v2885_v38 = vld [vmem:[%s3085_s5 + $0x10] sm:$0xff] }
 0xb90   :  { %v2316_v40 = vpop.f32.mrf.mxu0 }
 0xb91   :  { %2505 = vtanh.f32 %v690_v39  ;;  %v2109_v42 = vmul.f32 -1.442695, %v690_v39  ;;  %v2892_v39 = vld [vmem:[%s3085_s5 + $0x8] sm:$0xff]  ;;  %v2899_v40 = vld [vmem:[%s3085_s5] sm:$0xff] }
 0xb93   :  { %2507 = vpow2.f32 %v2109_v42 }
 0xb9e   :  { %v2506_v41 = vpop.eup %2505 }
 0xb9f   :  { %700 = vrot.lane.b32.xlu0 %v2506_v41, %s2603_s23 }
 0xba0   :  { %v2508_v43 = vpop.eup %2507 }
 0xba1   :  { %v694_v44 = vadd.f32 1.0, %v2508_v43 }
 0xba3   :  { %2509 = vrcp.f32 %v694_v44 }
 0xbb0   :  { %v2510_v45 = vpop.eup %2509 }
 0xbb1   :  { %v698_v48 = vmul.f32 %v2510_v45, %v603_v32 }
 0xc11   :  { %v701_v46 = vpop.permute.xlu0 %700 }
 0xc12   :  { %v703_v47 = vmul.f32 %v2510_v45, %v701_v46 }
 0xc14   :  { %705 = vrot.lane.b32.xlu1 %v703_v47, %s2604_s3 }
 0xc86   :  { %v706_v49 = vpop.permute.xlu1 %705 }
 0xc87   :  { %v708_v50 = vadd.f32 %v706_v49, %v698_v48 }
 0xc89   :  { %2511 = vtanh.f32 %v708_v50 }
 0xc96   :  { %v2512_v51 = vpop.eup %2511 }
 0xc97   :  { %711 = vrot.lane.b32.xlu0 %v2512_v51, %s2603_s23  ;;  %v2936_v51 = vld [vmem:[%s3086_s6] ss:$0 sm:$0xff] }
 0xd09   :  { %v712_v52 = vpop.permute.xlu0 %711 }
 0xd0a   :  { %v714_v53 = vmul.f32 %v2510_v45, %v712_v52  ;;  %v181_v45 = vadd.f32 %v2786_v57, %v2720_v9 }
 0xd0c   :  { %716 = vrot.lane.b32.xlu1 %v714_v53, %s2604_s3 }
 0xd7e   :  { %v717_v54 = vpop.permute.xlu1 %716 }
 0xd7f   :  { %720 = vst.msk [vmem:[#allocation3 + $0x20] sm:$0xff] %vm197_vm3, %v717_v54  ;;  %2326 = vmatmul.mubr.msk.f32.vlgmr.msra.gmra.mxu1 %vm197_vm3, %v717_v54 }
 0xd80   :  { %2340 = vmatpush3.msra.mxu1 %v2662_v2  ;;  %2347 = vmatprep.mubr.msk.f32.mxu1 %vm2602_vm2, %v2601_v0  ;;  %v171_v2 = vadd.f32 %v2782_v55, %v2720_v9 }
 0xd81   :  { %2341 = vmatprep.subr.mxu1 %v2601_v0 }
 0xd82   :  { %2342 = vmatpush3.msra.mxu1 %v2676_v5 }
 0xd83   :  { %2343 = vmatprep.subr.mxu1 %v2601_v0 }
 0xd84   :  { %2344 = vmatpush3.msra.mxu1 %v2684_v6 }
 0xd85   :  { %2345 = vmatprep.subr.mxu1 %v2601_v0 }
 0xd86   :  { %2346 = vmatpush3.msra.mxu1 %v2692_v7  ;;  %v1040_v21 = vld [vmem:[#allocation3 + $0x20] sm:$0xff] }
 0xd87   :  { %2370 = vmatprep.subr.mxu1 %v2601_v0 }
 0xe3f   :  { %v791_v56 = vpop.f32.mrf.mxu1 }
 0xe40   :  { %v795_v59 = vadd.f32 %v791_v56, %v171_v2 }
 0xe41   :  { %v2327_v60 = vpop.f32.mrf.mxu1 }
 0xe42   :  { %2513 = vtanh.f32 %v795_v59  ;;  %v2111_v5 = vmul.f32 -1.442695, %v795_v59 }
 0xe44   :  { %2515 = vpow2.f32 %v2111_v5 }
 0xe4f   :  { %v2514_v61 = vpop.eup %2513 }
 0xe50   :  { %805 = vrot.lane.b32.xlu0 %v2514_v61, %s2603_s23 }
 0xe51   :  { %v2516_v62 = vpop.eup %2515 }
 0xe52   :  { %v799_v6 = vadd.f32 1.0, %v2516_v62 }
 0xe54   :  { %2517 = vrcp.f32 %v799_v6 }
 0xe61   :  { %v2518_v63 = vpop.eup %2517 }
 0xe62   :  { %v803_v3 = vmul.f32 %v2518_v63, %v708_v50 }
 0xec2   :  { %v806_v1 = vpop.permute.xlu0 %805 }
 0xec3   :  { %v808_v7 = vmul.f32 %v2518_v63, %v806_v1 }
 0xec5   :  { %810 = vrot.lane.b32.xlu1 %v808_v7, %s2604_s3 }
 0xf37   :  { %v811_v4 = vpop.permute.xlu1 %810 }
 0xf38   :  { %v813_v55 = vadd.f32 %v811_v4, %v803_v3 }
 0xf3a   :  { %2519 = vtanh.f32 %v813_v55 }
 0xf47   :  { %v2520_v10 = vpop.eup %2519 }
 0xf48   :  { %816 = vrot.lane.b32.xlu0 %v2520_v10, %s2603_s23 }
 0xfba   :  { %v817_v11 = vpop.permute.xlu0 %816 }
 0xfbb   :  { %v819_v12 = vmul.f32 %v2518_v63, %v817_v11 }
 0xfbd   :  { %821 = vrot.lane.b32.xlu1 %v819_v12, %s2604_s3 }
0x102f   :  { %v822_v13 = vpop.permute.xlu1 %821 }
0x1030   :  { %825 = vst.msk [vmem:[#allocation3 + $0x28] sm:$0xff] %vm197_vm3, %v822_v13  ;;  %2337 = vmatmul.mubr.msk.f32.vlgmr.msra.gmra.mxu0 %vm197_vm3, %v822_v13 }
0x1031   :  { %2351 = vmatpush3.msra.mxu0 %v1047_v8  ;;  %2358 = vmatprep.mubr.msk.f32.mxu0 %vm197_vm3, %v1036_v15 }
0x1032   :  { %2352 = vmatprep.subr.mxu0 %v1046_v14 }
0x1033   :  { %2353 = vmatpush3.msra.mxu0 %v1046_v14 }
0x1034   :  { %2354 = vmatprep.subr.mxu0 %v1045_v16 }
0x1035   :  { %2355 = vmatpush3.msra.mxu0 %v1045_v16 }
0x1036   :  { %2356 = vmatprep.subr.mxu0 %v1044_v17 }
0x1037   :  { %2357 = vmatpush3.msra.mxu0 %v1044_v17  ;;  %v1041_v22 = vld [vmem:[#allocation3 + $0x28] sm:$0xff] }
0x1038   :  { %2359 = vmatmul.mubr.msk.f32.vlgmr.msra.gmra.mxu0 %vm197_vm3, %v1037_v18  ;;  %2392 = vmatprep.subr.mxu0 %v2601_v0 }
0x1039   :  { %2361 = vmatprep.mubr.msk.f32.mxu0 %vm197_vm3, %v1038_v19  ;;  %2393 = vmatpush3.msra.mxu0 %v2879_v37 }
0x103a   :  { %2394 = vmatprep.subr.mxu0 %v2601_v0 }
0x103b   :  { %2395 = vmatpush3.msra.mxu0 %v2885_v38 }
0x103c   :  { %2362 = vmatmul.mubr.msk.f32.gmra.mxu0 %vm197_vm3, %v1039_v20  ;;  %2396 = vmatprep.subr.mxu0 %v2601_v0 }
0x103d   :  { %2364 = vmatprep.mubr.msk.f32.mxu0 %vm197_vm3, %v1040_v21  ;;  %2397 = vmatpush3.msra.mxu0 %v2892_v39 }
0x103e   :  { %2398 = vmatprep.subr.mxu0 %v2601_v0 }
0x103f   :  { %2399 = vmatpush3.msra.mxu0 %v2899_v40 }
0x1040   :  { %2365 = vmatmul.mubr.msk.f32.gmra.mxu0 %vm197_vm3, %v1041_v22  ;;  %2414 = vmatprep.subr.mxu0 %v2601_v0 }
0x10f0   :  { %v896_v24 = vpop.f32.mrf.mxu0 }
0x10f1   :  { %v900_v25 = vadd.f32 %v896_v24, %v176_v23 }
0x10f2   :  { %v2338_v26 = vpop.f32.mrf.mxu0 }
0x10f3   :  { %2521 = vtanh.f32 %v900_v25  ;;  %v2113_v28 = vmul.f32 -1.442695, %v900_v25 }
0x10f5   :  { %2523 = vpow2.f32 %v2113_v28 }
0x10f8   :  { %v2931_v46 = vpop.f32.mrf.mxu0 }
0x10f9   :  { %v1151_v21 = vadd.f32 %v2931_v46, %v2936_v51 }
0x10fa   :  { %v1145_v50 = vpop.f32.mrf.mxu0 }
0x10fb   :  { %v1146_v52 = vadd.f32 %v2936_v51, %v1145_v50 }
0x1100   :  { %v2522_v27 = vpop.eup %2521 }
0x1101   :  { %910 = vrot.lane.b32.xlu0 %v2522_v27, %s2603_s23 }
0x1102   :  { %v2524_v29 = vpop.eup %2523 }
0x1103   :  { %v904_v30 = vadd.f32 1.0, %v2524_v29 }
0x1105   :  { %2525 = vrcp.f32 %v904_v30 }
0x1112   :  { %v2526_v31 = vpop.eup %2525 }
0x1113   :  { %v908_v34 = vmul.f32 %v2526_v31, %v813_v55 }
0x1173   :  { %v911_v32 = vpop.permute.xlu0 %910 }
0x1174   :  { %v913_v33 = vmul.f32 %v2526_v31, %v911_v32 }
0x1176   :  { %915 = vrot.lane.b32.xlu1 %v913_v33, %s2604_s3 }
0x11e8   :  { %v916_v35 = vpop.permute.xlu1 %915 }
0x11e9   :  { %v2872_v58 = vadd.f32 %v916_v35, %v908_v34 }
0x11eb   :  { %2527 = vtanh.f32 %v2872_v58 }
0x11f8   :  { %v2528_v36 = vpop.eup %2527 }
0x11f9   :  { %921 = vrot.lane.b32.xlu0 %v2528_v36, %s2603_s23 }
0x126b   :  { %v922_v41 = vpop.permute.xlu0 %921 }
0x126c   :  { %v924_v42 = vmul.f32 %v2526_v31, %v922_v41 }
0x126e   :  { %926 = vrot.lane.b32.xlu1 %v924_v42, %s2604_s3 }
0x12e0   :  { %v927_v43 = vpop.permute.xlu1 %926 }
0x12e1   :  { %930 = vst.msk [vmem:[#allocation3 + $0x30] sm:$0xff] %vm197_vm3, %v927_v43  ;;  %2348 = vmatmul.mubr.msk.f32.vlgmr.msra.gmra.mxu1 %vm197_vm3, %v927_v43 }
0x12e2   :  { %2371 = vmatpush3.msra.mxu1 %v2879_v37  ;;  %2378 = vmatprep.mubr.msk.f32.mxu1 %vm2602_vm2, %v2601_v0 }
0x12e3   :  { %2372 = vmatprep.subr.mxu1 %v2601_v0 }
0x12e4   :  { %2373 = vmatpush3.msra.mxu1 %v2885_v38 }
0x12e5   :  { %2374 = vmatprep.subr.mxu1 %v2601_v0 }
0x12e6   :  { %2375 = vmatpush3.msra.mxu1 %v2892_v39 }
0x12e7   :  { %2376 = vmatprep.subr.mxu1 %v2601_v0 }
0x12e8   :  { %2377 = vmatpush3.msra.mxu1 %v2899_v40  ;;  %v1042_v44 = vld [vmem:[#allocation3 + $0x30] sm:$0xff] }
0x12e9   :  { %2379 = vmatmul.mubr.f32.vlgmr.msra.gmra.mxu1 %v2601_v0  ;;  %2367 = vmatprep.mubr.msk.f32.mxu0 %vm197_vm3, %v1042_v44  ;;  %v2363_v44 = vpop.f32.mrf.mxu0 }
0x12ea   :  { %2381 = vmatprep.subr.mxu1 %v2601_v0  ;;  %2389 = vmatprep.mubr.msk.f32.mxu1 %vm2602_vm2, %v2601_v0 }
0x12eb   :  { %2382 = vmatpush3.msra.mxu1 %v2879_v37 }
0x12ec   :  { %2383 = vmatprep.subr.mxu1 %v2601_v0 }
0x12ed   :  { %2384 = vmatpush3.msra.mxu1 %v2885_v38 }
0x12ee   :  { %2385 = vmatprep.subr.mxu1 %v2601_v0 }
0x12ef   :  { %2386 = vmatpush3.msra.mxu1 %v2892_v39 }
0x12f0   :  { %2387 = vmatprep.subr.mxu1 %v2601_v0 }
0x12f1   :  { %2388 = vmatpush3.msra.mxu1 %v2899_v40 }
0x12f2   :  { %2403 = vmatprep.subr.mxu1 %v2601_v0 }
0x13a1   :  { %v1001_v47 = vpop.f32.mrf.mxu1 }
0x13a2   :  { %v1005_v48 = vadd.f32 %v1001_v47, %v181_v45  ;;  %v1155_v45 = vpop.f32.mrf.mxu0 }
0x13a3   :  { %v2349_v49 = vpop.f32.mrf.mxu1  ;;  %v1156_v50 = vadd.f32 %v2936_v51, %v1155_v45 }
0x13a4   :  { %v2115_v3 = vmul.f32 -1.442695, %v1005_v48  ;;  %v2980_v46 = vpop.f32.mrf.mxu0 }
0x13a6   :  { %v2982_v47 = vpop.f32.mrf.mxu0 }
0x13a9   :  { %v1263_v53 = vpop.f32.mrf.mxu1 }
0x13aa   :  { %v1267_v54 = vadd.f32 %v1263_v53, %v1146_v52 }
0x13ab   :  { %v2380_v2 = vpop.f32.mrf.mxu1 }
0x13ac   :  { %2529 = vtanh.f32 %v1267_v54  ;;  %v2125_v9 = vmul.f32 -1.442695, %v1267_v54 }
0x13ae   :  { %2531 = vpow2.f32 %v2125_v9 }
0x13b9   :  { %v2530_v56 = vpop.eup %2529 }
0x13ba   :  { %1277 = vrot.lane.b32.xlu0 %v2530_v56, %s2603_s23 }
0x13bb   :  { %v2532_v57 = vpop.eup %2531 }
0x13bc   :  { %v1271_v59 = vadd.f32 1.0, %v2532_v57 }
0x13be   :  { %2533 = vrcp.f32 %v1271_v59 }
0x13cb   :  { %v2534_v60 = vpop.eup %2533 }
0x13cc   :  { %v1275_v62 = vmul.f32 0.0, %v2534_v60 }
0x142c   :  { %v1278_v61 = vpop.permute.xlu0 %1277 }
0x142d   :  { %v1280_v5 = vmul.f32 %v2534_v60, %v1278_v61 }
0x142f   :  { %1282 = vrot.lane.b32.xlu1 %v1280_v5, %s2604_s3 }
0x14a1   :  { %v1283_v6 = vpop.permute.xlu1 %1282 }
0x14a2   :  { %v1285_v63 = vadd.f32 %v1283_v6, %v1275_v62 }
0x14a4   :  { %2535 = vtanh.f32 %v1285_v63 }
0x14a5   :  { %2537 = vtanh.f32 %v1005_v48 }
0x14a6   :  { %2539 = vpow2.f32 %v2115_v3 }
0x14b1   :  { %v2536_v1 = vpop.eup %2535 }
0x14b2   :  { %1288 = vrot.lane.b32.xlu0 %v2536_v1, %s2603_s23  ;;  %v2538_v7 = vpop.eup %2537 }
0x14b3   :  { %v2540_v4 = vpop.eup %2539 }
0x14b4   :  { %v1009_v55 = vadd.f32 1.0, %v2540_v4  ;;  %v1161_v4 = vadd.f32 %v2363_v44, %v2936_v51 }
0x14b6   :  { %1015 = vrot.lane.b32.xlu0 %v2538_v7, %s2603_s23  ;;  %2541 = vrcp.f32 %v1009_v55 }
0x14c3   :  { %v2542_v11 = vpop.eup %2541 }
0x14c4   :  { %v1013_v15 = vmul.f32 %v2542_v11, %v2872_v58 }
0x1524   :  { %v1289_v8 = vpop.permute.xlu0 %1288 }
0x1525   :  { %v1291_v10 = vmul.f32 %v2534_v60, %v1289_v8 }
0x1527   :  { %1294 = vrot.lane.b32.xlu1 %v1291_v10, %s2604_s3 }
0x1528   :  { %v1016_v12 = vpop.permute.xlu0 %1015 }
0x1529   :  { %v1018_v13 = vmul.f32 %v2542_v11, %v1016_v12 }
0x152b   :  { %1020 = vrot.lane.b32.xlu0 %v1018_v13, %s2604_s3 }
0x1599   :  { %v1295_v14 = vpop.permute.xlu1 %1294 }
0x159a   :  { %2390 = vmatmul.mubr.msk.f32.vlgmr.msra.gmra.mxu1 %vm197_vm3, %v1295_v14 }
0x159b   :  { %2404 = vmatpush3.msra.mxu1 %v2879_v37  ;;  %2411 = vmatprep.mubr.msk.f32.mxu1 %vm2602_vm2, %v2601_v0 }
0x159c   :  { %2405 = vmatprep.subr.mxu1 %v2601_v0 }
0x159d   :  { %v1021_v16 = vpop.permute.xlu0 %1020  ;;  %2406 = vmatpush3.msra.mxu1 %v2885_v38 }
0x159e   :  { %v1023_v17 = vadd.f32 %v1021_v16, %v1013_v15  ;;  %2407 = vmatprep.subr.mxu1 %v2601_v0 }
0x159f   :  { %2408 = vmatpush3.msra.mxu1 %v2892_v39 }
0x15a0   :  { %2543 = vtanh.f32 %v1023_v17  ;;  %2409 = vmatprep.subr.mxu1 %v2601_v0 }
0x15a1   :  { %2410 = vmatpush3.msra.mxu1 %v2899_v40 }
0x15a2   :  { %2425 = vmatprep.subr.mxu1 %v2601_v0 }
0x15ad   :  { %v2544_v18 = vpop.eup %2543 }
0x15ae   :  { %1026 = vrot.lane.b32.xlu0 %v2544_v18, %s2603_s23 }
0x1620   :  { %v1027_v19 = vpop.permute.xlu0 %1026 }
0x1621   :  { %v1029_v20 = vmul.f32 %v2542_v11, %v1027_v19 }
0x1623   :  { %1031 = vrot.lane.b32.xlu0 %v1029_v20, %s2604_s3 }
0x165a   :  { %v1364_v22 = vpop.f32.mrf.mxu1 }
0x165b   :  { %v1368_v23 = vadd.f32 %v1364_v22, %v1151_v21 }
0x165c   :  { %v2391_v24 = vpop.f32.mrf.mxu1 }
0x165d   :  { %2545 = vtanh.f32 %v1368_v23  ;;  %v2127_v28 = vmul.f32 -1.442695, %v1368_v23 }
0x165f   :  { %2547 = vpow2.f32 %v2127_v28 }
0x166a   :  { %v2546_v25 = vpop.eup %2545 }
0x166b   :  { %1378 = vrot.lane.b32.xlu1 %v2546_v25, %s2603_s23  ;;  %v1166_v25 = vadd.f32 %v2936_v51, %v2982_v47  ;;  %v1171_v47 = vadd.f32 %v2980_v46, %v2936_v51 }
0x166c   :  { %v2548_v29 = vpop.eup %2547 }
0x166d   :  { %v1372_v30 = vadd.f32 1.0, %v2548_v29 }
0x166f   :  { %2549 = vrcp.f32 %v1372_v30 }
0x167c   :  { %v2550_v31 = vpop.eup %2549 }
0x167d   :  { %v1376_v34 = vmul.f32 %v2550_v31, %v1285_v63 }
0x1695   :  { %v1032_v26 = vpop.permute.xlu0 %1031 }
0x1696   :  { %1035 = vst.msk [vmem:[#allocation3 + $0x38] sm:$0xff] %vm197_vm3, %v1032_v26 }
0x169d   :  { %v1043_v27 = vld [vmem:[#allocation3 + $0x38] sm:$0xff] }
0x169e   :  { %2368 = vmatmul.mubr.msk.f32.gmra.mxu0 %vm197_vm3, %v1043_v27 }
0x169f   :  { %2400 = vmatprep.mubr.msk.f32.mxu0 %vm2602_vm2, %v2601_v0 }
0x16dd   :  { %v1379_v32 = vpop.permute.xlu1 %1378 }
0x16de   :  { %v1381_v33 = vmul.f32 %v2550_v31, %v1379_v32 }
0x16e0   :  { %1383 = vrot.lane.b32.xlu1 %v1381_v33, %s2604_s3 }
0x1752   :  { %v1384_v35 = vpop.permute.xlu1 %1383 }
0x1753   :  { %v1386_v58 = vadd.f32 %v1384_v35, %v1376_v34 }
0x1755   :  { %2551 = vtanh.f32 %v1386_v58 }
0x175e   :  { %v2984_v48 = vpop.f32.mrf.mxu0 }
0x1760   :  { %v2986_v49 = vpop.f32.mrf.mxu0 }
0x1762   :  { %v2552_v36 = vpop.eup %2551 }
0x1763   :  { %1389 = vrot.lane.b32.xlu1 %v2552_v36, %s2603_s23 }
0x17d5   :  { %v1390_v41 = vpop.permute.xlu1 %1389 }
0x17d6   :  { %v1392_v42 = vmul.f32 %v2550_v31, %v1390_v41 }
0x17d8   :  { %1395 = vrot.lane.b32.xlu1 %v1392_v42, %s2604_s3 }
0x184a   :  { %v1396_v43 = vpop.permute.xlu1 %1395 }
0x184b   :  { %2401 = vmatmul.mubr.msk.f32.vlgmr.msra.gmra.mxu0 %vm197_vm3, %v1396_v43 }
0x184c   :  { %2415 = vmatpush3.msra.mxu0 %v2879_v37  ;;  %2422 = vmatprep.mubr.msk.f32.mxu0 %vm2602_vm2, %v2601_v0 }
0x184d   :  { %2416 = vmatprep.subr.mxu0 %v2601_v0 }
0x184e   :  { %2417 = vmatpush3.msra.mxu0 %v2885_v38 }
0x184f   :  { %2418 = vmatprep.subr.mxu0 %v2601_v0 }
0x1850   :  { %2419 = vmatpush3.msra.mxu0 %v2892_v39 }
0x1851   :  { %2420 = vmatprep.subr.mxu0 %v2601_v0 }
0x1852   :  { %2421 = vmatpush3.msra.mxu0 %v2899_v40 }
0x1853   :  { %2436 = vmatprep.subr.mxu0 %v2601_v0 }
0x190b   :  { %v1465_v52 = vpop.f32.mrf.mxu0 }
0x190c   :  { %v1469_v53 = vadd.f32 %v1465_v52, %v1156_v50 }
0x190d   :  { %v2402_v54 = vpop.f32.mrf.mxu0 }
0x190e   :  { %2553 = vtanh.f32 %v1469_v53  ;;  %v2129_v56 = vmul.f32 -1.442695, %v1469_v53 }
0x1910   :  { %2555 = vpow2.f32 %v2129_v56 }
0x191b   :  { %v2554_v2 = vpop.eup %2553 }
0x191c   :  { %1479 = vrot.lane.b32.xlu0 %v2554_v2, %s2603_s23 }
0x191d   :  { %v2556_v9 = vpop.eup %2555 }
0x191e   :  { %v1473_v57 = vadd.f32 1.0, %v2556_v9 }
0x1920   :  { %2557 = vrcp.f32 %v1473_v57 }
0x192d   :  { %v2558_v59 = vpop.eup %2557 }
0x192e   :  { %v1477_v5 = vmul.f32 %v2558_v59, %v1386_v58 }
0x198e   :  { %v1480_v60 = vpop.permute.xlu0 %1479 }
0x198f   :  { %v1482_v61 = vmul.f32 %v2558_v59, %v1480_v60 }
0x1991   :  { %1484 = vrot.lane.b32.xlu1 %v1482_v61, %s2604_s3 }
0x1a03   :  { %v1485_v62 = vpop.permute.xlu1 %1484 }
0x1a04   :  { %v1487_v6 = vadd.f32 %v1485_v62, %v1477_v5  ;;  %v1176_v62 = vadd.f32 %v2936_v51, %v2986_v49 }
0x1a06   :  { %2559 = vtanh.f32 %v1487_v6 }
0x1a13   :  { %v2560_v63 = vpop.eup %2559 }
0x1a14   :  { %1490 = vrot.lane.b32.xlu0 %v2560_v63, %s2603_s23 }
0x1a86   :  { %v1491_v1 = vpop.permute.xlu0 %1490 }
0x1a87   :  { %v1493_v7 = vmul.f32 %v2558_v59, %v1491_v1 }
0x1a89   :  { %1496 = vrot.lane.b32.xlu1 %v1493_v7, %s2604_s3 }
0x1afb   :  { %v1497_v3 = vpop.permute.xlu1 %1496 }
0x1afc   :  { %2412 = vmatmul.mubr.msk.f32.vlgmr.msra.gmra.mxu1 %vm197_vm3, %v1497_v3 }
0x1afd   :  { %2426 = vmatpush3.msra.mxu1 %v2879_v37  ;;  %2433 = vmatprep.mubr.msk.f32.mxu1 %vm2602_vm2, %v2601_v0 }
0x1afe   :  { %2427 = vmatprep.subr.mxu1 %v2601_v0 }
0x1aff   :  { %2428 = vmatpush3.msra.mxu1 %v2885_v38 }
0x1b00   :  { %2429 = vmatprep.subr.mxu1 %v2601_v0 }
0x1b01   :  { %2430 = vmatpush3.msra.mxu1 %v2892_v39 }
0x1b02   :  { %2431 = vmatprep.subr.mxu1 %v2601_v0 }
0x1b03   :  { %2432 = vmatpush3.msra.mxu1 %v2899_v40 }
0x1b04   :  { %2447 = vmatprep.subr.mxu1 %v2601_v0 }
0x1bbc   :  { %v1566_v55 = vpop.f32.mrf.mxu1 }
0x1bbd   :  { %v1570_v8 = vadd.f32 %v1566_v55, %v1161_v4 }
0x1bbe   :  { %v2413_v10 = vpop.f32.mrf.mxu1 }
0x1bbf   :  { %2561 = vtanh.f32 %v1570_v8  ;;  %v2131_v12 = vmul.f32 -1.442695, %v1570_v8 }
0x1bc1   :  { %2563 = vpow2.f32 %v2131_v12 }
0x1bcc   :  { %v2562_v11 = vpop.eup %2561 }
0x1bcd   :  { %1580 = vrot.lane.b32.xlu0 %v2562_v11, %s2603_s23 }
0x1bce   :  { %v2564_v13 = vpop.eup %2563 }
0x1bcf   :  { %v1574_v14 = vadd.f32 1.0, %v2564_v13 }
0x1bd1   :  { %2565 = vrcp.f32 %v1574_v14 }
0x1bde   :  { %v2566_v15 = vpop.eup %2565 }
0x1bdf   :  { %v1578_v18 = vmul.f32 %v2566_v15, %v1487_v6 }
0x1c3f   :  { %v1581_v16 = vpop.permute.xlu0 %1580 }
0x1c40   :  { %v1583_v17 = vmul.f32 %v2566_v15, %v1581_v16 }
0x1c42   :  { %1585 = vrot.lane.b32.xlu1 %v1583_v17, %s2604_s3 }
0x1cb4   :  { %v1586_v19 = vpop.permute.xlu1 %1585 }
0x1cb5   :  { %v1588_v20 = vadd.f32 %v1586_v19, %v1578_v18  ;;  %v1181_v18 = vadd.f32 %v2984_v48, %v2936_v51  ;;  %v2002_v48 = vld [vmem:[%s3087_s7 + $0x18] sm:$0xff] }
0x1cb7   :  { %2567 = vtanh.f32 %v1588_v20 }
0x1cc4   :  { %v2568_v21 = vpop.eup %2567 }
0x1cc5   :  { %1591 = vrot.lane.b32.xlu0 %v2568_v21, %s2603_s23 }
0x1d37   :  { %v1592_v22 = vpop.permute.xlu0 %1591 }
0x1d38   :  { %v1594_v23 = vmul.f32 %v2566_v15, %v1592_v22 }
0x1d3a   :  { %1597 = vrot.lane.b32.xlu1 %v1594_v23, %s2604_s3 }
0x1dac   :  { %v1598_v24 = vpop.permute.xlu1 %1597 }
0x1dad   :  { %2423 = vmatmul.mubr.msk.f32.vlgmr.msra.gmra.mxu0 %vm197_vm3, %v1598_v24 }
0x1dae   :  { %2437 = vmatpush3.msra.mxu0 %v2879_v37  ;;  %2444 = vmatprep.mubr.msk.f32.mxu0 %vm2602_vm2, %v2601_v0 }
0x1daf   :  { %2438 = vmatprep.subr.mxu0 %v2601_v0 }
0x1db0   :  { %2439 = vmatpush3.msra.mxu0 %v2885_v38 }
0x1db1   :  { %2440 = vmatprep.subr.mxu0 %v2601_v0 }
0x1db2   :  { %2441 = vmatpush3.msra.mxu0 %v2892_v39 }
0x1db3   :  { %2442 = vmatprep.subr.mxu0 %v2601_v0 }
0x1db4   :  { %2443 = vmatpush3.msra.mxu0 %v2899_v40 }
0x1db5   :  { %2458 = vmatprep.subr.mxu0 %v2601_v0 }
0x1e6d   :  { %v1667_v26 = vpop.f32.mrf.mxu0 }
0x1e6e   :  { %v1671_v27 = vadd.f32 %v1667_v26, %v1166_v25 }
0x1e6f   :  { %v2424_v28 = vpop.f32.mrf.mxu0 }
0x1e70   :  { %2569 = vtanh.f32 %v1671_v27  ;;  %v2133_v30 = vmul.f32 -1.442695, %v1671_v27 }
0x1e72   :  { %2571 = vpow2.f32 %v2133_v30 }
0x1e7d   :  { %v2570_v29 = vpop.eup %2569 }
0x1e7e   :  { %1681 = vrot.lane.b32.xlu0 %v2570_v29, %s2603_s23 }
0x1e7f   :  { %v2572_v31 = vpop.eup %2571 }
0x1e80   :  { %v1675_v32 = vadd.f32 1.0, %v2572_v31  ;;  %v2001_v31 = vld [vmem:[%s3087_s7 + $0x10] sm:$0xff] }
0x1e82   :  { %2573 = vrcp.f32 %v1675_v32  ;;  %v2000_v32 = vld [vmem:[%s3087_s7 + $0x8] sm:$0xff] }
0x1e8f   :  { %v2574_v33 = vpop.eup %2573 }
0x1e90   :  { %v1679_v58 = vmul.f32 %v2574_v33, %v1588_v20 }
0x1ef0   :  { %v1682_v34 = vpop.permute.xlu0 %1681 }
0x1ef1   :  { %v1684_v35 = vmul.f32 %v2574_v33, %v1682_v34 }
0x1ef3   :  { %1686 = vrot.lane.b32.xlu1 %v1684_v35, %s2604_s3  ;;  %v14_v35 = vstv %s3088_s8 }
0x1ef4   :  { %15 = vst [vmem:[#allocation4] sm:$0x1] %v14_v35 }
0x1f65   :  { %v1687_v36 = vpop.permute.xlu1 %1686 }
0x1f66   :  { %v1689_v41 = vadd.f32 %v1687_v36, %v1679_v58 }
0x1f68   :  { %2575 = vtanh.f32 %v1689_v41 }
0x1f75   :  { %v2576_v42 = vpop.eup %2575 }
0x1f76   :  { %1692 = vrot.lane.b32.xlu0 %v2576_v42, %s2603_s23  ;;  %v2140_v42 = vld [vmem:[#allocation4] ss:$0 sm:$0xff] }
0x1fe8   :  { %v1693_v43 = vpop.permute.xlu0 %1692 }
0x1fe9   :  { %v1695_v44 = vmul.f32 %v2574_v33, %v1693_v43  ;;  %v1999_v33 = vld [vmem:[%s3087_s7] sm:$0xff] }
0x1feb   :  { %1698 = vrot.lane.b32.xlu1 %v1695_v44, %s2604_s3 }
0x205d   :  { %v1699_v45 = vpop.permute.xlu1 %1698 }
0x205e   :  { %2434 = vmatmul.mubr.msk.f32.vlgmr.msra.gmra.mxu1 %vm197_vm3, %v1699_v45 }
0x205f   :  { %2448 = vmatpush3.msra.mxu1 %v2879_v37  ;;  %2455 = vmatprep.mubr.msk.f32.mxu1 %vm2602_vm2, %v2601_v0 }
0x2060   :  { %2449 = vmatprep.subr.mxu1 %v2601_v0 }
0x2061   :  { %2450 = vmatpush3.msra.mxu1 %v2885_v38 }
0x2062   :  { %2451 = vmatprep.subr.mxu1 %v2601_v0 }
0x2063   :  { %2452 = vmatpush3.msra.mxu1 %v2892_v39 }
0x2064   :  { %2453 = vmatprep.subr.mxu1 %v2601_v0 }
0x2065   :  { %2454 = vmatpush3.msra.mxu1 %v2899_v40 }
0x211e   :  { %v1768_v50 = vpop.f32.mrf.mxu1 }
0x211f   :  { %v1772_v37 = vadd.f32 %v1768_v50, %v1171_v47 }
0x2120   :  { %v2435_v52 = vpop.f32.mrf.mxu1 }
0x2121   :  { %2577 = vtanh.f32 %v1772_v37  ;;  %v2135_v54 = vmul.f32 -1.442695, %v1772_v37 }
0x2123   :  { %2579 = vpow2.f32 %v2135_v54 }
0x212e   :  { %v2578_v53 = vpop.eup %2577 }
0x212f   :  { %1782 = vrot.lane.b32.xlu0 %v2578_v53, %s2603_s23 }
0x2130   :  { %v2580_v38 = vpop.eup %2579 }
0x2131   :  { %v1776_v2 = vadd.f32 1.0, %v2580_v38 }
0x2133   :  { %2581 = vrcp.f32 %v1776_v2 }
0x2140   :  { %v2582_v39 = vpop.eup %2581 }
0x2141   :  { %v1780_v40 = vmul.f32 %v2582_v39, %v1689_v41 }
0x21a1   :  { %v1783_v56 = vpop.permute.xlu0 %1782 }
0x21a2   :  { %v1785_v9 = vmul.f32 %v2582_v39, %v1783_v56 }
0x21a4   :  { %1787 = vrot.lane.b32.xlu1 %v1785_v9, %s2604_s3 }
0x2216   :  { %v1788_v57 = vpop.permute.xlu1 %1787 }
0x2217   :  { %v1790_v46 = vadd.f32 %v1788_v57, %v1780_v40 }
0x2219   :  { %2583 = vtanh.f32 %v1790_v46 }
0x2226   :  { %v2584_v59 = vpop.eup %2583 }
0x2227   :  { %1793 = vrot.lane.b32.xlu0 %v2584_v59, %s2603_s23 }
0x2299   :  { %v1794_v60 = vpop.permute.xlu0 %1793 }
0x229a   :  { %v1796_v61 = vmul.f32 %v2582_v39, %v1794_v60 }
0x229c   :  { %1799 = vrot.lane.b32.xlu1 %v1796_v61, %s2604_s3 }
0x230e   :  { %v1800_v5 = vpop.permute.xlu1 %1799 }
0x230f   :  { %2445 = vmatmul.mubr.msk.f32.vlgmr.msra.gmra.mxu0 %vm197_vm3, %v1800_v5 }
0x2310   :  { %2466 = vmatprep.mubr.msk.f32.mxu0 %vm2602_vm2, %v2601_v0  ;;  %2459 = vmatpush3.msra.mxu0 %v2002_v48 }
0x2311   :  { %2460 = vmatprep.subr.mxu0 %v2601_v0 }
0x2312   :  { %2461 = vmatpush3.msra.mxu0 %v2001_v31 }
0x2313   :  { %2462 = vmatprep.subr.mxu0 %v2601_v0 }
0x2314   :  { %2463 = vmatpush3.msra.mxu0 %v2000_v32 }
0x2315   :  { %2464 = vmatprep.subr.mxu0 %v2601_v0 }
0x2316   :  { %2465 = vmatpush3.msra.mxu0 %v1999_v33 }
0x23cf   :  { %v1869_v6 = vpop.f32.mrf.mxu0 }
0x23d0   :  { %v1873_v63 = vadd.f32 %v1869_v6, %v1176_v62 }
0x23d1   :  { %v2446_v1 = vpop.f32.mrf.mxu0 }
0x23d2   :  { %2585 = vtanh.f32 %v1873_v63  ;;  %v2137_v3 = vmul.f32 -1.442695, %v1873_v63 }
0x23d4   :  { %2587 = vpow2.f32 %v2137_v3 }
0x23df   :  { %v2586_v7 = vpop.eup %2585 }
0x23e0   :  { %1883 = vrot.lane.b32.xlu0 %v2586_v7, %s2603_s23 }
0x23e1   :  { %v2588_v4 = vpop.eup %2587 }
0x23e2   :  { %v1877_v55 = vadd.f32 1.0, %v2588_v4 }
0x23e4   :  { %2589 = vrcp.f32 %v1877_v55 }
0x23f1   :  { %v2590_v8 = vpop.eup %2589 }
0x23f2   :  { %v1881_v12 = vmul.f32 %v2590_v8, %v1790_v46 }
0x2452   :  { %v1884_v10 = vpop.permute.xlu0 %1883 }
0x2453   :  { %v1886_v11 = vmul.f32 %v2590_v8, %v1884_v10 }
0x2455   :  { %1888 = vrot.lane.b32.xlu1 %v1886_v11, %s2604_s3 }
0x24c7   :  { %v1889_v13 = vpop.permute.xlu1 %1888 }
0x24c8   :  { %v1891_v49 = vadd.f32 %v1889_v13, %v1881_v12 }
0x24ca   :  { %2591 = vtanh.f32 %v1891_v49 }
0x24d7   :  { %v2592_v14 = vpop.eup %2591 }
0x24d8   :  { %1894 = vrot.lane.b32.xlu0 %v2592_v14, %s2603_s23 }
0x254a   :  { %v1895_v15 = vpop.permute.xlu0 %1894 }
0x254b   :  { %v1897_v16 = vmul.f32 %v2590_v8, %v1895_v15 }
0x254d   :  { %1900 = vrot.lane.b32.xlu1 %v1897_v16, %s2604_s3 }
0x25bf   :  { %v1901_v17 = vpop.permute.xlu1 %1900 }
0x25c0   :  { %2456 = vmatmul.mubr.msk.f32.vlgmr.msra.gmra.mxu1 %vm197_vm3, %v1901_v17 }
0x2680   :  { %v1970_v19 = vpop.f32.mrf.mxu1 }
0x2681   :  { %v1974_v20 = vadd.f32 %v1970_v19, %v1181_v18 }
0x2682   :  { %v2457_v21 = vpop.f32.mrf.mxu1 }
0x2683   :  { %2593 = vtanh.f32 %v1974_v20  ;;  %v2139_v23 = vmul.f32 -1.442695, %v1974_v20 }
0x2685   :  { %2595 = vpow2.f32 %v2139_v23 }
0x2690   :  { %v2594_v22 = vpop.eup %2593 }
0x2691   :  { %1984 = vrot.lane.b32.xlu0 %v2594_v22, %s2603_s23 }
0x2692   :  { %v2596_v24 = vpop.eup %2595 }
0x2693   :  { %v1978_v25 = vadd.f32 1.0, %v2596_v24 }
0x2695   :  { %2597 = vrcp.f32 %v1978_v25 }
0x26a2   :  { %v2598_v26 = vpop.eup %2597 }
0x26a3   :  { %v1982_v29 = vmul.f32 %v2598_v26, %v1891_v49 }
0x2703   :  { %v1985_v27 = vpop.permute.xlu0 %1984 }
0x2704   :  { %v1987_v28 = vmul.f32 %v2598_v26, %v1985_v27 }
0x2706   :  { %1989 = vrot.lane.b32.xlu1 %v1987_v28, %s2604_s3 }
0x2778   :  { %v1990_v30 = vpop.permute.xlu1 %1989 }
0x2779   :  { %v1992_v51 = vadd.f32 %v1990_v30, %v1982_v29 }
0x277b   :  { %2599 = vtanh.f32 %v1992_v51 }
0x2788   :  { %v2600_v34 = vpop.eup %2599 }
0x2789   :  { %1995 = vrot.lane.b32.xlu0 %v2600_v34, %s2603_s23 }
0x27fb   :  { %v1996_v58 = vpop.permute.xlu0 %1995 }
0x27fc   :  { %v1998_v36 = vmul.f32 %v2598_v26, %v1996_v58 }
0x27fe   :  { %2011 = vrot.lane.b32.xlu1 %v1998_v36, %s2604_s3 }
0x2870   :  { %v2012_v41 = vpop.permute.xlu1 %2011 }
0x2871   :  { %2467 = vmatmul.mubr.msk.f32.vlgmr.msra.gmra.mxu0 %vm197_vm3, %v2012_v41 }
0x2931   :  { %v2081_v43 = vpop.f32.mrf.mxu0 }
0x2932   :  { %v2082_v0 = vadd.f32 %v2140_v42, %v2081_v43 }
0x2933   :  { %v2468_v44 = vpop.f32.mrf.mxu0 }
0x2934   :  { %2086 = vst.msk [vmem:[%s3089_s9] sm:$0xff] %vm2085_vm4, %v2082_v0 }

</bundles_post_ra>
